<compile_context>
chip_gen: v7x
topology: tpu7x:2x2x1
jax: 0.10.0
libtpu: 0.0.40
codegen_flags: <defaults>
</compile_context>

<pallas_src>
import functools

import jax
import jax.numpy as jnp
import numpy as np
from jax import lax
from jax.experimental import pallas as pl
from jax.experimental.pallas import tpu as pltpu

EPS = 1e-5                          # nn.BatchNorm2d default eps
_VMEM_LIMIT = 32 * 1024 * 1024      # explicit scoped-VMEM limit (safe on v7x)
_VMEM_BUDGET = 24 * 1024 * 1024     # allowed fused working set (headroom kept)


# ----------------------------------------------------------------------------
# In-kernel helpers
# ----------------------------------------------------------------------------
def _conv3x3_taps(xp_bf16, w_bf16):
    """3x3 conv (padding already applied) as 9 MXU taps, f32 accumulation.

    xp_bf16: (B, H+2, W+2, Cin) bf16 padded activations (value).
    w_bf16 : (3, 3, Cin, Cout)  bf16 weights (value).
    Returns (B*H*W, Cout) float32.
    """
    # NOTE: a single im2col K=9*Cin matmul would give one long-cadence MXU push
    # instead of 9 short ones; kept as per-tap dots for lowering robustness.
    B, Hpad, Wpad, Cin = xp_bf16.shape
    H, W = Hpad - 2, Wpad - 2
    Cout = w_bf16.shape[-1]
    acc = jnp.zeros((B * H * W, Cout), jnp.float32)
    for kh in range(3):
        for kw in range(3):
            patch = xp_bf16[:, kh:kh + H, kw:kw + W, :].reshape(B * H * W, Cin)
            acc = acc + jnp.dot(patch, w_bf16[kh, kw],
                                preferred_element_type=jnp.float32)
    return acc


def _bn_relu(y, mean, var, gamma, beta):
    """y: (rows, C) f32; mean/var/gamma/beta: (1, C) f32."""
    y = (y - mean) * lax.rsqrt(var + EPS) * gamma + beta
    return jnp.maximum(y, 0.0)


# ----------------------------------------------------------------------------
# Fused kernel: grid = (N,), batch axis is a sequential ("arbitrary") axis.
# ----------------------------------------------------------------------------
def down_fused_kernel(x_ref, w1_ref, g1_ref, b1_ref, w2_ref, g2_ref, b2_ref,
                      o_ref, xp_scr, y1_scr, sum_scr, ssq_scr):
    i = pl.program_id(0)
    nsteps = pl.num_programs(0)

    # Static shapes from the refs.
    _, H, Wp, twoC = x_ref.shape          # input block (1, H, W/2, 2*Cin)
    Cin = twoC // 2
    Hp = H // 2
    Nb, _, _, Cmid = y1_scr.shape         # (N, Hp+2, Wp+2, Cmid)
    Cout = o_ref.shape[-1]

    # ---- one-time init: zero borders (conv padding) + BN1 accumulators -----
    @pl.when(i == 0)
    def _init():
        xp_scr[...] = jnp.zeros_like(xp_scr)
        y1_scr[...] = jnp.zeros_like(y1_scr)
        sum_scr[...] = jnp.zeros_like(sum_scr)
        ssq_scr[...] = jnp.zeros_like(ssq_scr)

    # ---- 2x2 max-pool of this batch element, entirely in VMEM --------------
    # Input block layout is (1, H, W/2, 2*Cin): the last dim interleaves the
    # (even-w, odd-w) column pair, so W-pooling is a lane-slice max; H-pooling
    # is a max over row pairs via a leading-dim split (layout no-op reshape).
    xb = x_ref[...]                                           # f32
    xb = xb.reshape(1, Hp, 2, Wp, twoC)
    xh = jnp.maximum(xb[:, :, 0, :, :], xb[:, :, 1, :, :])    # pool over H
    pooled = jnp.maximum(xh[..., :Cin], xh[..., Cin:])        # pool over W
    xp_scr[:, 1:Hp + 1, 1:Wp + 1, :] = pooled                 # zero border = pad

    # ---- conv1: 3x3, pad=1, no bias; bf16 MXU operands, f32 accumulate -----
    acc1 = _conv3x3_taps(xp_scr[...].astype(jnp.bfloat16), w1_ref[...])

    # Park raw conv1 output (padded scratch, interior only) and accumulate the
    # BN1 per-channel sum / sum-of-squares across batch steps.
    y1_scr[pl.ds(i, 1), 1:Hp + 1, 1:Wp + 1, :] = acc1.reshape(1, Hp, Wp, Cmid)
    sum_scr[...] += jnp.sum(acc1, axis=0, keepdims=True)
    ssq_scr[...] += jnp.sum(acc1 * acc1, axis=0, keepdims=True)

    # ---- last step: BN1+ReLU, conv2, BN2+ReLU, lane write of the output ----
    @pl.when(i == nsteps - 1)
    def _finalize():
        cnt = float(Nb * Hp * Wp)
        mean1 = sum_scr[...] * (1.0 / cnt)
        var1 = ssq_scr[...] * (1.0 / cnt) - mean1 * mean1     # biased batch var

        y1 = y1_scr[:, 1:Hp + 1, 1:Wp + 1, :].reshape(Nb * Hp * Wp, Cmid)
        y1 = _bn_relu(y1, mean1, var1, g1_ref[...], b1_ref[...])
        # Write back interior only: the zero border stays as conv2's padding.
        y1_scr[:, 1:Hp + 1, 1:Wp + 1, :] = y1.reshape(Nb, Hp, Wp, Cmid)

        acc2 = _conv3x3_taps(y1_scr[...].astype(jnp.bfloat16), w2_ref[...])
        mean2 = jnp.mean(acc2, axis=0, keepdims=True)
        var2 = jnp.mean(jnp.square(acc2 - mean2), axis=0, keepdims=True)
        y2 = _bn_relu(acc2, mean2, var2, g2_ref[...], b2_ref[...])
        o_ref[...] = y2.reshape(Nb, Hp, Wp, Cout)


# ----------------------------------------------------------------------------
# Wrapper
# ----------------------------------------------------------------------------
def down_forward(x_nchw, params):
    """x_nchw: (N, Cin, H, W) f32 -> (N, Cout, H/2, W/2) f32."""
    w1, g1, b1, w2, g2, b2 = params
    N, Cin, H, W = x_nchw.shape
    if H % 2 or W % 2:
        raise ValueError("even H and W required (MaxPool2d(2)); odd sizes are "
                         "floored by PyTorch and not supported here")
    Hp, Wp = H // 2, W // 2
    Cmid, Cout = w1.shape[-1], w2.shape[-1]

    # Layout glue: NCHW -> NHWC (channels on the lane axis), then a FREE
    # row-major regroup (N,H,W,C) -> (N,H,W/2,2C) so the in-kernel pool needs
    # no strided gathers and no duplicated views tensor in HBM.
    xg = jnp.transpose(x_nchw, (0, 2, 3, 1)).astype(jnp.float32)
    xg = xg.reshape(N, H, Wp, 2 * Cin)

    # bf16 weights: native MXU dtype on v5e/v6e/v7x, halves weight DMA bytes.
    w1b = w1.astype(jnp.bfloat16)
    w2b = w2.astype(jnp.bfloat16)

    # VMEM working-set budget for the fused (single-residency) kernel.
    fused_bytes = 4 * (
        N * (Hp + 2) * (Wp + 2) * Cmid      # padded conv1 activations (scratch)
        + (Hp + 2) * (Wp + 2) * Cin         # padded pooled block (scratch)
        + N * Hp * Wp * Cout                # output block
        + 2 * H * Wp * 2 * Cin              # double-buffered input block
    )
    # TODO(synk): for shapes whose fused working set exceeds this budget,
    # switch to a tiled two-pass BatchNorm pipeline (per-tile conv with
    # sum/sumsq accumulators, then a normalize+ReLU epilogue kernel).
    assert fused_bytes <= _VMEM_BUDGET, (
        f"fused Down working set ({fused_bytes} B) exceeds the VMEM budget")

    out = pl.pallas_call(
        down_fused_kernel,
        grid=(N,),
        in_specs=[
            pl.BlockSpec((1, H, Wp, 2 * Cin), lambda i: (i, 0, 0, 0)),
            pl.BlockSpec(w1b.shape, lambda i: (0, 0, 0, 0)),
            pl.BlockSpec(g1.shape, lambda i: (0, 0)),
            pl.BlockSpec(b1.shape, lambda i: (0, 0)),
            pl.BlockSpec(w2b.shape, lambda i: (0, 0, 0, 0)),
            pl.BlockSpec(g2.shape, lambda i: (0, 0)),
            pl.BlockSpec(b2.shape, lambda i: (0, 0)),
        ],
        out_specs=pl.BlockSpec((N, Hp, Wp, Cout), lambda i: (0, 0, 0, 0)),
        out_shape=jax.ShapeDtypeStruct((N, Hp, Wp, Cout), jnp.float32),
        scratch_shapes=[
            pltpu.VMEM((1, Hp + 2, Wp + 2, Cin), jnp.float32),   # pooled + pad
            pltpu.VMEM((N, Hp + 2, Wp + 2, Cmid), jnp.float32),  # conv1 out + pad
            pltpu.VMEM((1, Cmid), jnp.float32),                  # BN1 sum
            pltpu.VMEM((1, Cmid), jnp.float32),                  # BN1 sum of sq
        ],
        compiler_params=pltpu.CompilerParams(
            # The batch axis carries the BN accumulation -> sequential.
            dimension_semantics=("arbitrary",),
            vmem_limit_bytes=_VMEM_LIMIT,
        ),
    )(xg, w1b, g1, b1, w2b, g2, b2)

    return jnp.transpose(out, (0, 3, 1, 2))   # NHWC -> NCHW


# ----------------------------------------------------------------------------
# Pure-JAX references (for correctness checks)
# ----------------------------------------------------------------------------
def ref_forward(x_nchw, params, bf16_matmul):
    w1, g1, b1, w2, g2, b2 = params
    xh = jnp.transpose(x_nchw, (0, 2, 3, 1)).astype(jnp.float32)
    pooled = lax.reduce_window(xh, -jnp.inf, lax.max,
                               (1, 2, 2, 1), (1, 2, 2, 1), "VALID")

    def cbr(z, w, g, bta):
        if bf16_matmul:
            z = z.astype(jnp.bfloat16)
            w = w.astype(jnp.bfloat16)
            prec = lax.Precision.DEFAULT
        else:
            prec = lax.Precision.HIGHEST
        y = lax.conv_general_dilated(
            z, w, (1, 1), "SAME",
            dimension_numbers=("NHWC", "HWIO", "NHWC"),
            preferred_element_type=jnp.float32, precision=prec)
        m = jnp.mean(y, axis=(0, 1, 2))
        v = jnp.mean(jnp.square(y - m), axis=(0, 1, 2))
        y = (y - m) * lax.rsqrt(v + EPS) * g.reshape(-1) + bta.reshape(-1)
        return jnp.maximum(y, 0.0)

    y = cbr(pooled, w1, g1, b1)
    y = cbr(y, w2, g2, b2)
    return jnp.transpose(y, (0, 3, 1, 2))


# ----------------------------------------------------------------------------
def make_params(key, in_channels, out_channels):
    mid_channels = out_channels  # DoubleConv default: mid = out
    k = jax.random.split(key, 6)
    w1 = 0.2 * jax.random.normal(k[0], (3, 3, in_channels, mid_channels), jnp.float32)
    g1 = 1.0 + 0.1 * jax.random.normal(k[1], (1, mid_channels), jnp.float32)
    b1 = 0.1 * jax.random.normal(k[2], (1, mid_channels), jnp.float32)
    w2 = 0.2 * jax.random.normal(k[3], (3, 3, mid_channels, out_channels), jnp.float32)
    g2 = 1.0 + 0.1 * jax.random.normal(k[4], (1, out_channels), jnp.float32)
    b2 = 0.1 * jax.random.normal(k[5], (1, out_channels), jnp.float32)
    return (w1, g1, b1, w2, g2, b2)


if __name__ == "__main__":
    key = jax.random.PRNGKey(0)
    kx, kp = jax.random.split(key)

    N, Cin, H, W = 2, 4, 16, 16
    Cout = 8
    x = jax.random.normal(kx, (N, Cin, H, W), jnp.float32)
    params = make_params(kp, Cin, Cout)

    out = jax.block_until_ready(jax.jit(down_forward)(x, params))
    assert out.shape == (N, Cout, H // 2, W // 2), out.shape

    # 1) Tight check vs. a reference that mirrors the kernel's bf16 MXU
    #    operands (validates the Pallas implementation itself).
    ref_bf16 = jax.block_until_ready(
        jax.jit(functools.partial(ref_forward, bf16_matmul=True))(x, params))
    np.testing.assert_allclose(np.asarray(out), np.asarray(ref_bf16),
                               rtol=1e-3, atol=1e-3)

    # 2) Looser check vs. full-f32 module semantics (bounds the bf16
    #    quantization of the MXU operands).
    ref_f32 = jax.block_until_ready(
        jax.jit(functools.partial(ref_forward, bf16_matmul=False))(x, params))
    np.testing.assert_allclose(np.asarray(out), np.asarray(ref_f32),
                               rtol=6e-2, atol=6e-2)

    print("KERNEL_OK")
</pallas_src>

<mosaic_0001>
module attributes {stable_mosaic.version = 11 : i64} {
  func.func @down_fused_kernel(%arg0: i32, %arg1: memref<1x16x8x8xf32, #tpu.memory_space<vmem>>, %arg2: memref<3x3x4x8xbf16, #tpu.memory_space<vmem>>, %arg3: memref<1x8xf32, #tpu.memory_space<vmem>>, %arg4: memref<1x8xf32, #tpu.memory_space<vmem>>, %arg5: memref<3x3x8x8xbf16, #tpu.memory_space<vmem>>, %arg6: memref<1x8xf32, #tpu.memory_space<vmem>>, %arg7: memref<1x8xf32, #tpu.memory_space<vmem>>, %arg8: memref<2x8x8x8xf32, #tpu.memory_space<vmem>>, %arg9: memref<1x10x10x4xf32, #tpu.memory_space<vmem>>, %arg10: memref<2x10x10x8xf32, #tpu.memory_space<vmem>>, %arg11: memref<1x8xf32, #tpu.memory_space<vmem>>, %arg12: memref<1x8xf32, #tpu.memory_space<vmem>>) attributes {dimension_semantics = [#tpu.dimension_semantics<arbitrary>], iteration_bounds = array<i64: 2>, scalar_prefetch = 0 : i64, scratch_operands = 4 : i64, tpu.core_type = #tpu.core_type<tc>, window_params = [{transform_indices = @transform_0, window_bounds = array<i64: 1, 16, 8, 8>}, {pipeline_mode = #tpu.pipeline_mode<synchronous>, transform_indices = @transform_1, window_bounds = array<i64: 3, 3, 4, 8>}, {pipeline_mode = #tpu.pipeline_mode<synchronous>, transform_indices = @transform_2, window_bounds = array<i64: 1, 8>}, {pipeline_mode = #tpu.pipeline_mode<synchronous>, transform_indices = @transform_3, window_bounds = array<i64: 1, 8>}, {pipeline_mode = #tpu.pipeline_mode<synchronous>, transform_indices = @transform_4, window_bounds = array<i64: 3, 3, 8, 8>}, {pipeline_mode = #tpu.pipeline_mode<synchronous>, transform_indices = @transform_5, window_bounds = array<i64: 1, 8>}, {pipeline_mode = #tpu.pipeline_mode<synchronous>, transform_indices = @transform_6, window_bounds = array<i64: 1, 8>}, {pipeline_mode = #tpu.pipeline_mode<synchronous>, transform_indices = @transform_7, window_bounds = array<i64: 2, 8, 8, 8>}]} {
    %c0_i32 = arith.constant 0 : i32
    %0 = arith.cmpi eq, %arg0, %c0_i32 : i32
    %1 = arith.extui %0 : i1 to i32
    %c0_i32_0 = arith.constant 0 : i32
    %2 = arith.cmpi ne, %1, %c0_i32_0 : i32
    scf.if %2 {
      %cst_38 = arith.constant 0.000000e+00 : f32
      %89 = vector.broadcast %cst_38 : f32 to vector<1x10x10x4xf32>
      %c0_39 = arith.constant 0 : index
      %c0_40 = arith.constant 0 : index
      %c0_41 = arith.constant 0 : index
      %c0_42 = arith.constant 0 : index
      %90 = vector.load %arg9[%c0_39, %c0_40, %c0_41, %c0_42] : memref<1x10x10x4xf32, #tpu.memory_space<vmem>>, vector<1x10x10x4xf32>
      tpu.vector_store %arg9[%c0_39, %c0_40, %c0_41, %c0_42], %89 {strides = array<i32>} : memref<1x10x10x4xf32, #tpu.memory_space<vmem>>, vector<1x10x10x4xf32>,
      %cst_43 = arith.constant 0.000000e+00 : f32
      %91 = vector.broadcast %cst_43 : f32 to vector<2x10x10x8xf32>
      %c0_44 = arith.constant 0 : index
      %c0_45 = arith.constant 0 : index
      %c0_46 = arith.constant 0 : index
      %c0_47 = arith.constant 0 : index
      %92 = vector.load %arg10[%c0_44, %c0_45, %c0_46, %c0_47] : memref<2x10x10x8xf32, #tpu.memory_space<vmem>>, vector<2x10x10x8xf32>
      tpu.vector_store %arg10[%c0_44, %c0_45, %c0_46, %c0_47], %91 {strides = array<i32>} : memref<2x10x10x8xf32, #tpu.memory_space<vmem>>, vector<2x10x10x8xf32>,
      %cst_48 = arith.constant 0.000000e+00 : f32
      %93 = vector.broadcast %cst_48 : f32 to vector<1x8xf32>
      %c0_49 = arith.constant 0 : index
      %c0_50 = arith.constant 0 : index
      %94 = vector.load %arg11[%c0_49, %c0_50] : memref<1x8xf32, #tpu.memory_space<vmem>>, vector<1x8xf32>
      tpu.vector_store %arg11[%c0_49, %c0_50], %93 {strides = array<i32>} : memref<1x8xf32, #tpu.memory_space<vmem>>, vector<1x8xf32>,
      %cst_51 = arith.constant 0.000000e+00 : f32
      %95 = vector.broadcast %cst_51 : f32 to vector<1x8xf32>
      %c0_52 = arith.constant 0 : index
      %c0_53 = arith.constant 0 : index
      %96 = vector.load %arg12[%c0_52, %c0_53] : memref<1x8xf32, #tpu.memory_space<vmem>>, vector<1x8xf32>
      tpu.vector_store %arg12[%c0_52, %c0_53], %95 {strides = array<i32>} : memref<1x8xf32, #tpu.memory_space<vmem>>, vector<1x8xf32>,
    } else {
    }
    %c0 = arith.constant 0 : index
    %c0_1 = arith.constant 0 : index
    %c0_2 = arith.constant 0 : index
    %c0_3 = arith.constant 0 : index
    %3 = vector.load %arg1[%c0, %c0_1, %c0_2, %c0_3] : memref<1x16x8x8xf32, #tpu.memory_space<vmem>>, vector<1x16x8x8xf32>
    %4 = vector.shape_cast %3 : vector<1x16x8x8xf32> to vector<1x8x2x8x8xf32>
    %5 = vector.extract_strided_slice %4 {offsets = [0, 0, 0, 0, 0], sizes = [1, 8, 1, 8, 8], strides = [1, 1, 1, 1, 1]} : vector<1x8x2x8x8xf32> to vector<1x8x1x8x8xf32>
    %6 = vector.shape_cast %5 : vector<1x8x1x8x8xf32> to vector<1x8x8x8xf32>
    %7 = vector.extract_strided_slice %4 {offsets = [0, 0, 1, 0, 0], sizes = [1, 8, 1, 8, 8], strides = [1, 1, 1, 1, 1]} : vector<1x8x2x8x8xf32> to vector<1x8x1x8x8xf32>
    %8 = vector.shape_cast %7 : vector<1x8x1x8x8xf32> to vector<1x8x8x8xf32>
    %9 = arith.maximumf %6, %8 : vector<1x8x8x8xf32>
    %10 = vector.extract_strided_slice %9 {offsets = [0, 0, 0, 0], sizes = [1, 8, 8, 4], strides = [1, 1, 1, 1]} : vector<1x8x8x8xf32> to vector<1x8x8x4xf32>
    %11 = vector.extract_strided_slice %9 {offsets = [0, 0, 0, 4], sizes = [1, 8, 8, 4], strides = [1, 1, 1, 1]} : vector<1x8x8x8xf32> to vector<1x8x8x4xf32>
    %12 = arith.maximumf %10, %11 : vector<1x8x8x4xf32>
    %c0_4 = arith.constant 0 : index
    %c1 = arith.constant 1 : index
    %c1_5 = arith.constant 1 : index
    %c0_6 = arith.constant 0 : index
    %13 = vector.load %arg9[%c0_4, %c1, %c1_5, %c0_6] : memref<1x10x10x4xf32, #tpu.memory_space<vmem>>, vector<1x8x8x4xf32>
    tpu.vector_store %arg9[%c0_4, %c1, %c1_5, %c0_6], %12 {strides = array<i32>} : memref<1x10x10x4xf32, #tpu.memory_space<vmem>>, vector<1x8x8x4xf32>,
    %c0_7 = arith.constant 0 : index
    %c0_8 = arith.constant 0 : index
    %c0_9 = arith.constant 0 : index
    %c0_10 = arith.constant 0 : index
    %14 = vector.load %arg9[%c0_7, %c0_8, %c0_9, %c0_10] : memref<1x10x10x4xf32, #tpu.memory_space<vmem>>, vector<1x10x10x4xf32>
    %15 = arith.truncf %14 : vector<1x10x10x4xf32> to vector<1x10x10x4xbf16>
    %c0_11 = arith.constant 0 : index
    %c0_12 = arith.constant 0 : index
    %c0_13 = arith.constant 0 : index
    %c0_14 = arith.constant 0 : index
    %16 = vector.load %arg2[%c0_11, %c0_12, %c0_13, %c0_14] : memref<3x3x4x8xbf16, #tpu.memory_space<vmem>>, vector<3x3x4x8xbf16>
    %cst = arith.constant 0.000000e+00 : f32
    %17 = vector.broadcast %cst : f32 to vector<64x8xf32>
    %18 = vector.extract_strided_slice %15 {offsets = [0, 0, 0, 0], sizes = [1, 8, 8, 4], strides = [1, 1, 1, 1]} : vector<1x10x10x4xbf16> to vector<1x8x8x4xbf16>
    %19 = vector.shape_cast %18 : vector<1x8x8x4xbf16> to vector<64x4xbf16>
    %20 = vector.extract_strided_slice %16 {offsets = [0, 0, 0, 0], sizes = [1, 1, 4, 8], strides = [1, 1, 1, 1]} : vector<3x3x4x8xbf16> to vector<1x1x4x8xbf16>
    %21 = vector.shape_cast %20 : vector<1x1x4x8xbf16> to vector<4x8xbf16>
    %cst_15 = arith.constant dense<0.000000e+00> : vector<64x8xf32>
    %22 = tpu.matmul %19, %21, %cst_15 {dimension_numbers = #tpu.dot_dimension_numbers<[1], [0], [0], [1], [0, 0, 1, 1], [], []>} : vector<64x4xbf16>, vector<4x8xbf16>, vector<64x8xf32> -> vector<64x8xf32>
    %23 = arith.addf %17, %22 : vector<64x8xf32>
    %24 = vector.extract_strided_slice %15 {offsets = [0, 0, 1, 0], sizes = [1, 8, 8, 4], strides = [1, 1, 1, 1]} : vector<1x10x10x4xbf16> to vector<1x8x8x4xbf16>
    %25 = vector.shape_cast %24 : vector<1x8x8x4xbf16> to vector<64x4xbf16>
    %26 = vector.extract_strided_slice %16 {offsets = [0, 1, 0, 0], sizes = [1, 1, 4, 8], strides = [1, 1, 1, 1]} : vector<3x3x4x8xbf16> to vector<1x1x4x8xbf16>
    %27 = vector.shape_cast %26 : vector<1x1x4x8xbf16> to vector<4x8xbf16>
    %cst_16 = arith.constant dense<0.000000e+00> : vector<64x8xf32>
    %28 = tpu.matmul %25, %27, %cst_16 {dimension_numbers = #tpu.dot_dimension_numbers<[1], [0], [0], [1], [0, 0, 1, 1], [], []>} : vector<64x4xbf16>, vector<4x8xbf16>, vector<64x8xf32> -> vector<64x8xf32>
    %29 = arith.addf %23, %28 : vector<64x8xf32>
    %30 = vector.extract_strided_slice %15 {offsets = [0, 0, 2, 0], sizes = [1, 8, 8, 4], strides = [1, 1, 1, 1]} : vector<1x10x10x4xbf16> to vector<1x8x8x4xbf16>
    %31 = vector.shape_cast %30 : vector<1x8x8x4xbf16> to vector<64x4xbf16>
    %32 = vector.extract_strided_slice %16 {offsets = [0, 2, 0, 0], sizes = [1, 1, 4, 8], strides = [1, 1, 1, 1]} : vector<3x3x4x8xbf16> to vector<1x1x4x8xbf16>
    %33 = vector.shape_cast %32 : vector<1x1x4x8xbf16> to vector<4x8xbf16>
    %cst_17 = arith.constant dense<0.000000e+00> : vector<64x8xf32>
    %34 = tpu.matmul %31, %33, %cst_17 {dimension_numbers = #tpu.dot_dimension_numbers<[1], [0], [0], [1], [0, 0, 1, 1], [], []>} : vector<64x4xbf16>, vector<4x8xbf16>, vector<64x8xf32> -> vector<64x8xf32>
    %35 = arith.addf %29, %34 : vector<64x8xf32>
    %36 = vector.extract_strided_slice %15 {offsets = [0, 1, 0, 0], sizes = [1, 8, 8, 4], strides = [1, 1, 1, 1]} : vector<1x10x10x4xbf16> to vector<1x8x8x4xbf16>
    %37 = vector.shape_cast %36 : vector<1x8x8x4xbf16> to vector<64x4xbf16>
    %38 = vector.extract_strided_slice %16 {offsets = [1, 0, 0, 0], sizes = [1, 1, 4, 8], strides = [1, 1, 1, 1]} : vector<3x3x4x8xbf16> to vector<1x1x4x8xbf16>
    %39 = vector.shape_cast %38 : vector<1x1x4x8xbf16> to vector<4x8xbf16>
    %cst_18 = arith.constant dense<0.000000e+00> : vector<64x8xf32>
    %40 = tpu.matmul %37, %39, %cst_18 {dimension_numbers = #tpu.dot_dimension_numbers<[1], [0], [0], [1], [0, 0, 1, 1], [], []>} : vector<64x4xbf16>, vector<4x8xbf16>, vector<64x8xf32> -> vector<64x8xf32>
    %41 = arith.addf %35, %40 : vector<64x8xf32>
    %42 = vector.extract_strided_slice %15 {offsets = [0, 1, 1, 0], sizes = [1, 8, 8, 4], strides = [1, 1, 1, 1]} : vector<1x10x10x4xbf16> to vector<1x8x8x4xbf16>
    %43 = vector.shape_cast %42 : vector<1x8x8x4xbf16> to vector<64x4xbf16>
    %44 = vector.extract_strided_slice %16 {offsets = [1, 1, 0, 0], sizes = [1, 1, 4, 8], strides = [1, 1, 1, 1]} : vector<3x3x4x8xbf16> to vector<1x1x4x8xbf16>
    %45 = vector.shape_cast %44 : vector<1x1x4x8xbf16> to vector<4x8xbf16>
    %cst_19 = arith.constant dense<0.000000e+00> : vector<64x8xf32>
    %46 = tpu.matmul %43, %45, %cst_19 {dimension_numbers = #tpu.dot_dimension_numbers<[1], [0], [0], [1], [0, 0, 1, 1], [], []>} : vector<64x4xbf16>, vector<4x8xbf16>, vector<64x8xf32> -> vector<64x8xf32>
    %47 = arith.addf %41, %46 : vector<64x8xf32>
    %48 = vector.extract_strided_slice %15 {offsets = [0, 1, 2, 0], sizes = [1, 8, 8, 4], strides = [1, 1, 1, 1]} : vector<1x10x10x4xbf16> to vector<1x8x8x4xbf16>
    %49 = vector.shape_cast %48 : vector<1x8x8x4xbf16> to vector<64x4xbf16>
    %50 = vector.extract_strided_slice %16 {offsets = [1, 2, 0, 0], sizes = [1, 1, 4, 8], strides = [1, 1, 1, 1]} : vector<3x3x4x8xbf16> to vector<1x1x4x8xbf16>
    %51 = vector.shape_cast %50 : vector<1x1x4x8xbf16> to vector<4x8xbf16>
    %cst_20 = arith.constant dense<0.000000e+00> : vector<64x8xf32>
    %52 = tpu.matmul %49, %51, %cst_20 {dimension_numbers = #tpu.dot_dimension_numbers<[1], [0], [0], [1], [0, 0, 1, 1], [], []>} : vector<64x4xbf16>, vector<4x8xbf16>, vector<64x8xf32> -> vector<64x8xf32>
    %53 = arith.addf %47, %52 : vector<64x8xf32>
    %54 = vector.extract_strided_slice %15 {offsets = [0, 2, 0, 0], sizes = [1, 8, 8, 4], strides = [1, 1, 1, 1]} : vector<1x10x10x4xbf16> to vector<1x8x8x4xbf16>
    %55 = vector.shape_cast %54 : vector<1x8x8x4xbf16> to vector<64x4xbf16>
    %56 = vector.extract_strided_slice %16 {offsets = [2, 0, 0, 0], sizes = [1, 1, 4, 8], strides = [1, 1, 1, 1]} : vector<3x3x4x8xbf16> to vector<1x1x4x8xbf16>
    %57 = vector.shape_cast %56 : vector<1x1x4x8xbf16> to vector<4x8xbf16>
    %cst_21 = arith.constant dense<0.000000e+00> : vector<64x8xf32>
    %58 = tpu.matmul %55, %57, %cst_21 {dimension_numbers = #tpu.dot_dimension_numbers<[1], [0], [0], [1], [0, 0, 1, 1], [], []>} : vector<64x4xbf16>, vector<4x8xbf16>, vector<64x8xf32> -> vector<64x8xf32>
    %59 = arith.addf %53, %58 : vector<64x8xf32>
    %60 = vector.extract_strided_slice %15 {offsets = [0, 2, 1, 0], sizes = [1, 8, 8, 4], strides = [1, 1, 1, 1]} : vector<1x10x10x4xbf16> to vector<1x8x8x4xbf16>
    %61 = vector.shape_cast %60 : vector<1x8x8x4xbf16> to vector<64x4xbf16>
    %62 = vector.extract_strided_slice %16 {offsets = [2, 1, 0, 0], sizes = [1, 1, 4, 8], strides = [1, 1, 1, 1]} : vector<3x3x4x8xbf16> to vector<1x1x4x8xbf16>
    %63 = vector.shape_cast %62 : vector<1x1x4x8xbf16> to vector<4x8xbf16>
    %cst_22 = arith.constant dense<0.000000e+00> : vector<64x8xf32>
    %64 = tpu.matmul %61, %63, %cst_22 {dimension_numbers = #tpu.dot_dimension_numbers<[1], [0], [0], [1], [0, 0, 1, 1], [], []>} : vector<64x4xbf16>, vector<4x8xbf16>, vector<64x8xf32> -> vector<64x8xf32>
    %65 = arith.addf %59, %64 : vector<64x8xf32>
    %66 = vector.extract_strided_slice %15 {offsets = [0, 2, 2, 0], sizes = [1, 8, 8, 4], strides = [1, 1, 1, 1]} : vector<1x10x10x4xbf16> to vector<1x8x8x4xbf16>
    %67 = vector.shape_cast %66 : vector<1x8x8x4xbf16> to vector<64x4xbf16>
    %68 = vector.extract_strided_slice %16 {offsets = [2, 2, 0, 0], sizes = [1, 1, 4, 8], strides = [1, 1, 1, 1]} : vector<3x3x4x8xbf16> to vector<1x1x4x8xbf16>
    %69 = vector.shape_cast %68 : vector<1x1x4x8xbf16> to vector<4x8xbf16>
    %cst_23 = arith.constant dense<0.000000e+00> : vector<64x8xf32>
    %70 = tpu.matmul %67, %69, %cst_23 {dimension_numbers = #tpu.dot_dimension_numbers<[1], [0], [0], [1], [0, 0, 1, 1], [], []>} : vector<64x4xbf16>, vector<4x8xbf16>, vector<64x8xf32> -> vector<64x8xf32>
    %71 = arith.addf %65, %70 : vector<64x8xf32>
    %72 = vector.shape_cast %71 : vector<64x8xf32> to vector<1x8x8x8xf32>
    %73 = arith.index_cast %arg0 : i32 to index
    %c1_24 = arith.constant 1 : index
    %c1_25 = arith.constant 1 : index
    %c0_26 = arith.constant 0 : index
    %74 = vector.load %arg10[%73, %c1_24, %c1_25, %c0_26] : memref<2x10x10x8xf32, #tpu.memory_space<vmem>>, vector<1x8x8x8xf32>
    tpu.vector_store %arg10[%73, %c1_24, %c1_25, %c0_26], %72 {strides = array<i32>} : memref<2x10x10x8xf32, #tpu.memory_space<vmem>>, vector<1x8x8x8xf32>,
    %c0_27 = arith.constant 0 : index
    %c0_28 = arith.constant 0 : index
    %75 = vector.load %arg11[%c0_27, %c0_28] : memref<1x8xf32, #tpu.memory_space<vmem>>, vector<1x8xf32>
    %cst_29 = arith.constant dense<0.000000e+00> : vector<8xf32>
    %76 = vector.multi_reduction <add>, %71, %cst_29 [0] : vector<64x8xf32> to vector<8xf32>
    %77 = vector.shape_cast %76 : vector<8xf32> to vector<1x8xf32>
    %78 = arith.addf %75, %77 : vector<1x8xf32>
    %c0_30 = arith.constant 0 : index
    %c0_31 = arith.constant 0 : index
    %79 = vector.load %arg11[%c0_30, %c0_31] : memref<1x8xf32, #tpu.memory_space<vmem>>, vector<1x8xf32>
    tpu.vector_store %arg11[%c0_30, %c0_31], %78 {strides = array<i32>} : memref<1x8xf32, #tpu.memory_space<vmem>>, vector<1x8xf32>,
    %c0_32 = arith.constant 0 : index
    %c0_33 = arith.constant 0 : index
    %80 = vector.load %arg12[%c0_32, %c0_33] : memref<1x8xf32, #tpu.memory_space<vmem>>, vector<1x8xf32>
    %81 = arith.mulf %71, %71 : vector<64x8xf32>
    %cst_34 = arith.constant dense<0.000000e+00> : vector<8xf32>
    %82 = vector.multi_reduction <add>, %81, %cst_34 [0] : vector<64x8xf32> to vector<8xf32>
    %83 = vector.shape_cast %82 : vector<8xf32> to vector<1x8xf32>
    %84 = arith.addf %80, %83 : vector<1x8xf32>
    %c0_35 = arith.constant 0 : index
    %c0_36 = arith.constant 0 : index
    %85 = vector.load %arg12[%c0_35, %c0_36] : memref<1x8xf32, #tpu.memory_space<vmem>>, vector<1x8xf32>
    tpu.vector_store %arg12[%c0_35, %c0_36], %84 {strides = array<i32>} : memref<1x8xf32, #tpu.memory_space<vmem>>, vector<1x8xf32>,
    %c1_i32 = arith.constant 1 : i32
    %86 = arith.cmpi eq, %arg0, %c1_i32 : i32
    %87 = arith.extui %86 : i1 to i32
    %c0_i32_37 = arith.constant 0 : i32
    %88 = arith.cmpi ne, %87, %c0_i32_37 : i32
    scf.if %88 {
      %c0_38 = arith.constant 0 : index
      %c0_39 = arith.constant 0 : index
      %89 = vector.load %arg11[%c0_38, %c0_39] : memref<1x8xf32, #tpu.memory_space<vmem>>, vector<1x8xf32>
      %cst_40 = arith.constant 7.812500e-03 : f32
      %90 = vector.broadcast %cst_40 : f32 to vector<1x8xf32>
      %91 = arith.mulf %89, %90 : vector<1x8xf32>
      %c0_41 = arith.constant 0 : index
      %c0_42 = arith.constant 0 : index
      %92 = vector.load %arg12[%c0_41, %c0_42] : memref<1x8xf32, #tpu.memory_space<vmem>>, vector<1x8xf32>
      %cst_43 = arith.constant 7.812500e-03 : f32
      %93 = vector.broadcast %cst_43 : f32 to vector<1x8xf32>
      %94 = arith.mulf %92, %93 : vector<1x8xf32>
      %95 = arith.mulf %91, %91 : vector<1x8xf32>
      %96 = arith.subf %94, %95 : vector<1x8xf32>
      %c0_44 = arith.constant 0 : index
      %c1_45 = arith.constant 1 : index
      %c1_46 = arith.constant 1 : index
      %c0_47 = arith.constant 0 : index
      %97 = vector.load %arg10[%c0_44, %c1_45, %c1_46, %c0_47] : memref<2x10x10x8xf32, #tpu.memory_space<vmem>>, vector<2x8x8x8xf32>
      %98 = vector.shape_cast %97 : vector<2x8x8x8xf32> to vector<128x8xf32>
      %c0_48 = arith.constant 0 : index
      %c0_49 = arith.constant 0 : index
      %99 = vector.load %arg3[%c0_48, %c0_49] : memref<1x8xf32, #tpu.memory_space<vmem>>, vector<1x8xf32>
      %c0_50 = arith.constant 0 : index
      %c0_51 = arith.constant 0 : index
      %100 = vector.load %arg4[%c0_50, %c0_51] : memref<1x8xf32, #tpu.memory_space<vmem>>, vector<1x8xf32>
      %101 = vector.broadcast %91 : vector<1x8xf32> to vector<128x8xf32>
      %102 = arith.subf %98, %101 : vector<128x8xf32>
      %cst_52 = arith.constant 9.99999974E-6 : f32
      %103 = vector.broadcast %cst_52 : f32 to vector<1x8xf32>
      %104 = arith.addf %96, %103 : vector<1x8xf32>
      %105 = math.rsqrt %104 : vector<1x8xf32>
      %106 = vector.broadcast %105 : vector<1x8xf32> to vector<128x8xf32>
      %107 = arith.mulf %102, %106 : vector<128x8xf32>
      %108 = vector.broadcast %99 : vector<1x8xf32> to vector<128x8xf32>
      %109 = arith.mulf %107, %108 : vector<128x8xf32>
      %110 = vector.broadcast %100 : vector<1x8xf32> to vector<128x8xf32>
      %111 = arith.addf %109, %110 : vector<128x8xf32>
      %cst_53 = arith.constant 0.000000e+00 : f32
      %112 = vector.broadcast %cst_53 : f32 to vector<128x8xf32>
      %113 = arith.maximumf %111, %112 : vector<128x8xf32>
      %114 = vector.shape_cast %113 : vector<128x8xf32> to vector<2x8x8x8xf32>
      %c0_54 = arith.constant 0 : index
      %c1_55 = arith.constant 1 : index
      %c1_56 = arith.constant 1 : index
      %c0_57 = arith.constant 0 : index
      %115 = vector.load %arg10[%c0_54, %c1_55, %c1_56, %c0_57] : memref<2x10x10x8xf32, #tpu.memory_space<vmem>>, vector<2x8x8x8xf32>
      tpu.vector_store %arg10[%c0_54, %c1_55, %c1_56, %c0_57], %114 {strides = array<i32>} : memref<2x10x10x8xf32, #tpu.memory_space<vmem>>, vector<2x8x8x8xf32>,
      %c0_58 = arith.constant 0 : index
      %c0_59 = arith.constant 0 : index
      %c0_60 = arith.constant 0 : index
      %c0_61 = arith.constant 0 : index
      %116 = vector.load %arg10[%c0_58, %c0_59, %c0_60, %c0_61] : memref<2x10x10x8xf32, #tpu.memory_space<vmem>>, vector<2x10x10x8xf32>
      %117 = arith.truncf %116 : vector<2x10x10x8xf32> to vector<2x10x10x8xbf16>
      %c0_62 = arith.constant 0 : index
      %c0_63 = arith.constant 0 : index
      %c0_64 = arith.constant 0 : index
      %c0_65 = arith.constant 0 : index
      %118 = vector.load %arg5[%c0_62, %c0_63, %c0_64, %c0_65] : memref<3x3x8x8xbf16, #tpu.memory_space<vmem>>, vector<3x3x8x8xbf16>
      %cst_66 = arith.constant 0.000000e+00 : f32
      %119 = vector.broadcast %cst_66 : f32 to vector<128x8xf32>
      %120 = vector.extract_strided_slice %117 {offsets = [0, 0, 0, 0], sizes = [2, 8, 8, 8], strides = [1, 1, 1, 1]} : vector<2x10x10x8xbf16> to vector<2x8x8x8xbf16>
      %121 = vector.shape_cast %120 : vector<2x8x8x8xbf16> to vector<128x8xbf16>
      %122 = vector.extract_strided_slice %118 {offsets = [0, 0, 0, 0], sizes = [1, 1, 8, 8], strides = [1, 1, 1, 1]} : vector<3x3x8x8xbf16> to vector<1x1x8x8xbf16>
      %123 = vector.shape_cast %122 : vector<1x1x8x8xbf16> to vector<8x8xbf16>
      %cst_67 = arith.constant dense<0.000000e+00> : vector<128x8xf32>
      %124 = tpu.matmul %121, %123, %cst_67 {dimension_numbers = #tpu.dot_dimension_numbers<[1], [0], [0], [1], [0, 0, 1, 1], [], []>} : vector<128x8xbf16>, vector<8x8xbf16>, vector<128x8xf32> -> vector<128x8xf32>
      %125 = arith.addf %119, %124 : vector<128x8xf32>
      %126 = vector.extract_strided_slice %117 {offsets = [0, 0, 1, 0], sizes = [2, 8, 8, 8], strides = [1, 1, 1, 1]} : vector<2x10x10x8xbf16> to vector<2x8x8x8xbf16>
      %127 = vector.shape_cast %126 : vector<2x8x8x8xbf16> to vector<128x8xbf16>
      %128 = vector.extract_strided_slice %118 {offsets = [0, 1, 0, 0], sizes = [1, 1, 8, 8], strides = [1, 1, 1, 1]} : vector<3x3x8x8xbf16> to vector<1x1x8x8xbf16>
      %129 = vector.shape_cast %128 : vector<1x1x8x8xbf16> to vector<8x8xbf16>
      %cst_68 = arith.constant dense<0.000000e+00> : vector<128x8xf32>
      %130 = tpu.matmul %127, %129, %cst_68 {dimension_numbers = #tpu.dot_dimension_numbers<[1], [0], [0], [1], [0, 0, 1, 1], [], []>} : vector<128x8xbf16>, vector<8x8xbf16>, vector<128x8xf32> -> vector<128x8xf32>
      %131 = arith.addf %125, %130 : vector<128x8xf32>
      %132 = vector.extract_strided_slice %117 {offsets = [0, 0, 2, 0], sizes = [2, 8, 8, 8], strides = [1, 1, 1, 1]} : vector<2x10x10x8xbf16> to vector<2x8x8x8xbf16>
      %133 = vector.shape_cast %132 : vector<2x8x8x8xbf16> to vector<128x8xbf16>
      %134 = vector.extract_strided_slice %118 {offsets = [0, 2, 0, 0], sizes = [1, 1, 8, 8], strides = [1, 1, 1, 1]} : vector<3x3x8x8xbf16> to vector<1x1x8x8xbf16>
      %135 = vector.shape_cast %134 : vector<1x1x8x8xbf16> to vector<8x8xbf16>
      %cst_69 = arith.constant dense<0.000000e+00> : vector<128x8xf32>
      %136 = tpu.matmul %133, %135, %cst_69 {dimension_numbers = #tpu.dot_dimension_numbers<[1], [0], [0], [1], [0, 0, 1, 1], [], []>} : vector<128x8xbf16>, vector<8x8xbf16>, vector<128x8xf32> -> vector<128x8xf32>
      %137 = arith.addf %131, %136 : vector<128x8xf32>
      %138 = vector.extract_strided_slice %117 {offsets = [0, 1, 0, 0], sizes = [2, 8, 8, 8], strides = [1, 1, 1, 1]} : vector<2x10x10x8xbf16> to vector<2x8x8x8xbf16>
      %139 = vector.shape_cast %138 : vector<2x8x8x8xbf16> to vector<128x8xbf16>
      %140 = vector.extract_strided_slice %118 {offsets = [1, 0, 0, 0], sizes = [1, 1, 8, 8], strides = [1, 1, 1, 1]} : vector<3x3x8x8xbf16> to vector<1x1x8x8xbf16>
      %141 = vector.shape_cast %140 : vector<1x1x8x8xbf16> to vector<8x8xbf16>
      %cst_70 = arith.constant dense<0.000000e+00> : vector<128x8xf32>
      %142 = tpu.matmul %139, %141, %cst_70 {dimension_numbers = #tpu.dot_dimension_numbers<[1], [0], [0], [1], [0, 0, 1, 1], [], []>} : vector<128x8xbf16>, vector<8x8xbf16>, vector<128x8xf32> -> vector<128x8xf32>
      %143 = arith.addf %137, %142 : vector<128x8xf32>
      %144 = vector.extract_strided_slice %117 {offsets = [0, 1, 1, 0], sizes = [2, 8, 8, 8], strides = [1, 1, 1, 1]} : vector<2x10x10x8xbf16> to vector<2x8x8x8xbf16>
      %145 = vector.shape_cast %144 : vector<2x8x8x8xbf16> to vector<128x8xbf16>
      %146 = vector.extract_strided_slice %118 {offsets = [1, 1, 0, 0], sizes = [1, 1, 8, 8], strides = [1, 1, 1, 1]} : vector<3x3x8x8xbf16> to vector<1x1x8x8xbf16>
      %147 = vector.shape_cast %146 : vector<1x1x8x8xbf16> to vector<8x8xbf16>
      %cst_71 = arith.constant dense<0.000000e+00> : vector<128x8xf32>
      %148 = tpu.matmul %145, %147, %cst_71 {dimension_numbers = #tpu.dot_dimension_numbers<[1], [0], [0], [1], [0, 0, 1, 1], [], []>} : vector<128x8xbf16>, vector<8x8xbf16>, vector<128x8xf32> -> vector<128x8xf32>
      %149 = arith.addf %143, %148 : vector<128x8xf32>
      %150 = vector.extract_strided_slice %117 {offsets = [0, 1, 2, 0], sizes = [2, 8, 8, 8], strides = [1, 1, 1, 1]} : vector<2x10x10x8xbf16> to vector<2x8x8x8xbf16>
      %151 = vector.shape_cast %150 : vector<2x8x8x8xbf16> to vector<128x8xbf16>
      %152 = vector.extract_strided_slice %118 {offsets = [1, 2, 0, 0], sizes = [1, 1, 8, 8], strides = [1, 1, 1, 1]} : vector<3x3x8x8xbf16> to vector<1x1x8x8xbf16>
      %153 = vector.shape_cast %152 : vector<1x1x8x8xbf16> to vector<8x8xbf16>
      %cst_72 = arith.constant dense<0.000000e+00> : vector<128x8xf32>
      %154 = tpu.matmul %151, %153, %cst_72 {dimension_numbers = #tpu.dot_dimension_numbers<[1], [0], [0], [1], [0, 0, 1, 1], [], []>} : vector<128x8xbf16>, vector<8x8xbf16>, vector<128x8xf32> -> vector<128x8xf32>
      %155 = arith.addf %149, %154 : vector<128x8xf32>
      %156 = vector.extract_strided_slice %117 {offsets = [0, 2, 0, 0], sizes = [2, 8, 8, 8], strides = [1, 1, 1, 1]} : vector<2x10x10x8xbf16> to vector<2x8x8x8xbf16>
      %157 = vector.shape_cast %156 : vector<2x8x8x8xbf16> to vector<128x8xbf16>
      %158 = vector.extract_strided_slice %118 {offsets = [2, 0, 0, 0], sizes = [1, 1, 8, 8], strides = [1, 1, 1, 1]} : vector<3x3x8x8xbf16> to vector<1x1x8x8xbf16>
      %159 = vector.shape_cast %158 : vector<1x1x8x8xbf16> to vector<8x8xbf16>
      %cst_73 = arith.constant dense<0.000000e+00> : vector<128x8xf32>
      %160 = tpu.matmul %157, %159, %cst_73 {dimension_numbers = #tpu.dot_dimension_numbers<[1], [0], [0], [1], [0, 0, 1, 1], [], []>} : vector<128x8xbf16>, vector<8x8xbf16>, vector<128x8xf32> -> vector<128x8xf32>
      %161 = arith.addf %155, %160 : vector<128x8xf32>
      %162 = vector.extract_strided_slice %117 {offsets = [0, 2, 1, 0], sizes = [2, 8, 8, 8], strides = [1, 1, 1, 1]} : vector<2x10x10x8xbf16> to vector<2x8x8x8xbf16>
      %163 = vector.shape_cast %162 : vector<2x8x8x8xbf16> to vector<128x8xbf16>
      %164 = vector.extract_strided_slice %118 {offsets = [2, 1, 0, 0], sizes = [1, 1, 8, 8], strides = [1, 1, 1, 1]} : vector<3x3x8x8xbf16> to vector<1x1x8x8xbf16>
      %165 = vector.shape_cast %164 : vector<1x1x8x8xbf16> to vector<8x8xbf16>
      %cst_74 = arith.constant dense<0.000000e+00> : vector<128x8xf32>
      %166 = tpu.matmul %163, %165, %cst_74 {dimension_numbers = #tpu.dot_dimension_numbers<[1], [0], [0], [1], [0, 0, 1, 1], [], []>} : vector<128x8xbf16>, vector<8x8xbf16>, vector<128x8xf32> -> vector<128x8xf32>
      %167 = arith.addf %161, %166 : vector<128x8xf32>
      %168 = vector.extract_strided_slice %117 {offsets = [0, 2, 2, 0], sizes = [2, 8, 8, 8], strides = [1, 1, 1, 1]} : vector<2x10x10x8xbf16> to vector<2x8x8x8xbf16>
      %169 = vector.shape_cast %168 : vector<2x8x8x8xbf16> to vector<128x8xbf16>
      %170 = vector.extract_strided_slice %118 {offsets = [2, 2, 0, 0], sizes = [1, 1, 8, 8], strides = [1, 1, 1, 1]} : vector<3x3x8x8xbf16> to vector<1x1x8x8xbf16>
      %171 = vector.shape_cast %170 : vector<1x1x8x8xbf16> to vector<8x8xbf16>
      %cst_75 = arith.constant dense<0.000000e+00> : vector<128x8xf32>
      %172 = tpu.matmul %169, %171, %cst_75 {dimension_numbers = #tpu.dot_dimension_numbers<[1], [0], [0], [1], [0, 0, 1, 1], [], []>} : vector<128x8xbf16>, vector<8x8xbf16>, vector<128x8xf32> -> vector<128x8xf32>
      %173 = arith.addf %167, %172 : vector<128x8xf32>
      %cst_76 = arith.constant dense<0.000000e+00> : vector<8xf32>
      %174 = vector.multi_reduction <add>, %173, %cst_76 [0] : vector<128x8xf32> to vector<8xf32>
      %175 = vector.shape_cast %174 : vector<8xf32> to vector<1x8xf32>
      %cst_77 = arith.constant 1.280000e+02 : f32
      %176 = vector.broadcast %cst_77 : f32 to vector<1x8xf32>
      %177 = arith.divf %175, %176 : vector<1x8xf32>
      %178 = vector.broadcast %177 : vector<1x8xf32> to vector<128x8xf32>
      %179 = arith.subf %173, %178 : vector<128x8xf32>
      %180 = arith.mulf %179, %179 : vector<128x8xf32>
      %cst_78 = arith.constant dense<0.000000e+00> : vector<8xf32>
      %181 = vector.multi_reduction <add>, %180, %cst_78 [0] : vector<128x8xf32> to vector<8xf32>
      %182 = vector.shape_cast %181 : vector<8xf32> to vector<1x8xf32>
      %cst_79 = arith.constant 1.280000e+02 : f32
      %183 = vector.broadcast %cst_79 : f32 to vector<1x8xf32>
      %184 = arith.divf %182, %183 : vector<1x8xf32>
      %c0_80 = arith.constant 0 : index
      %c0_81 = arith.constant 0 : index
      %185 = vector.load %arg6[%c0_80, %c0_81] : memref<1x8xf32, #tpu.memory_space<vmem>>, vector<1x8xf32>
      %c0_82 = arith.constant 0 : index
      %c0_83 = arith.constant 0 : index
      %186 = vector.load %arg7[%c0_82, %c0_83] : memref<1x8xf32, #tpu.memory_space<vmem>>, vector<1x8xf32>
      %187 = vector.broadcast %177 : vector<1x8xf32> to vector<128x8xf32>
      %188 = arith.subf %173, %187 : vector<128x8xf32>
      %cst_84 = arith.constant 9.99999974E-6 : f32
      %189 = vector.broadcast %cst_84 : f32 to vector<1x8xf32>
      %190 = arith.addf %184, %189 : vector<1x8xf32>
      %191 = math.rsqrt %190 : vector<1x8xf32>
      %192 = vector.broadcast %191 : vector<1x8xf32> to vector<128x8xf32>
      %193 = arith.mulf %188, %192 : vector<128x8xf32>
      %194 = vector.broadcast %185 : vector<1x8xf32> to vector<128x8xf32>
      %195 = arith.mulf %193, %194 : vector<128x8xf32>
      %196 = vector.broadcast %186 : vector<1x8xf32> to vector<128x8xf32>
      %197 = arith.addf %195, %196 : vector<128x8xf32>
      %cst_85 = arith.constant 0.000000e+00 : f32
      %198 = vector.broadcast %cst_85 : f32 to vector<128x8xf32>
      %199 = arith.maximumf %197, %198 : vector<128x8xf32>
      %200 = vector.shape_cast %199 : vector<128x8xf32> to vector<2x8x8x8xf32>
      %c0_86 = arith.constant 0 : index
      %c0_87 = arith.constant 0 : index
      %c0_88 = arith.constant 0 : index
      %c0_89 = arith.constant 0 : index
      %201 = vector.load %arg8[%c0_86, %c0_87, %c0_88, %c0_89] : memref<2x8x8x8xf32, #tpu.memory_space<vmem>>, vector<2x8x8x8xf32>
      tpu.vector_store %arg8[%c0_86, %c0_87, %c0_88, %c0_89], %200 {strides = array<i32>} : memref<2x8x8x8xf32, #tpu.memory_space<vmem>>, vector<2x8x8x8xf32>,
    } else {
    }
    return
  }
  func.func @transform_0(%arg0: i32) -> (i32, i32, i32, i32) {
    %c0_i32 = arith.constant 0 : i32
    %c0_i32_0 = arith.constant 0 : i32
    %c0_i32_1 = arith.constant 0 : i32
    %c0_i32_2 = arith.constant 0 : i32
    return %arg0, %c0_i32, %c0_i32_0, %c0_i32_1 : i32, i32, i32, i32
  }
  func.func @transform_1(%arg0: i32) -> (i32, i32, i32, i32) {
    %c0_i32 = arith.constant 0 : i32
    %c0_i32_0 = arith.constant 0 : i32
    %c0_i32_1 = arith.constant 0 : i32
    %c0_i32_2 = arith.constant 0 : i32
    %c0_i32_3 = arith.constant 0 : i32
    return %c0_i32, %c0_i32_0, %c0_i32_1, %c0_i32_2 : i32, i32, i32, i32
  }
  func.func @transform_2(%arg0: i32) -> (i32, i32) {
    %c0_i32 = arith.constant 0 : i32
    %c0_i32_0 = arith.constant 0 : i32
    %c0_i32_1 = arith.constant 0 : i32
    return %c0_i32, %c0_i32_0 : i32, i32
  }
  func.func @transform_3(%arg0: i32) -> (i32, i32) {
    %c0_i32 = arith.constant 0 : i32
    %c0_i32_0 = arith.constant 0 : i32
    %c0_i32_1 = arith.constant 0 : i32
    return %c0_i32, %c0_i32_0 : i32, i32
  }
  func.func @transform_4(%arg0: i32) -> (i32, i32, i32, i32) {
    %c0_i32 = arith.constant 0 : i32
    %c0_i32_0 = arith.constant 0 : i32
    %c0_i32_1 = arith.constant 0 : i32
    %c0_i32_2 = arith.constant 0 : i32
    %c0_i32_3 = arith.constant 0 : i32
    return %c0_i32, %c0_i32_0, %c0_i32_1, %c0_i32_2 : i32, i32, i32, i32
  }
  func.func @transform_5(%arg0: i32) -> (i32, i32) {
    %c0_i32 = arith.constant 0 : i32
    %c0_i32_0 = arith.constant 0 : i32
    %c0_i32_1 = arith.constant 0 : i32
    return %c0_i32, %c0_i32_0 : i32, i32
  }
  func.func @transform_6(%arg0: i32) -> (i32, i32) {
    %c0_i32 = arith.constant 0 : i32
    %c0_i32_0 = arith.constant 0 : i32
    %c0_i32_1 = arith.constant 0 : i32
    return %c0_i32, %c0_i32_0 : i32, i32
  }
  func.func @transform_7(%arg0: i32) -> (i32, i32, i32, i32) {
    %c0_i32 = arith.constant 0 : i32
    %c0_i32_0 = arith.constant 0 : i32
    %c0_i32_1 = arith.constant 0 : i32
    %c0_i32_2 = arith.constant 0 : i32
    %c0_i32_3 = arith.constant 0 : i32
    return %c0_i32, %c0_i32_0, %c0_i32_1, %c0_i32_2 : i32, i32, i32, i32
  }
}

</mosaic_0001>

<bundles_post_ra>
// kernel: down_forward.1
= control target key start
LH: loop header
LB: loop body
LE: loop exit
PB: predicated region body
PF: predicated region fallthrough
CT: control target
= control target key end

     0   :  { %s4784_s24 = smov 0   ;;  %s6266_s0 = inlined_call_operand.vmem [shape: f32[2,16,8,8], index: 0, kind: input, shape index: {}]   ;;  %s6267_s1 = inlined_call_operand.vmem [shape: bf16[3,3,4,8], index: 1, kind: input, shape index: {}]   ;;  %s6268_s2 = inlined_call_operand.vmem [shape: f32[1,8], index: 2, kind: input, shape index: {}]   ;;  %s6269_s3 = inlined_call_operand.vmem [shape: f32[1,8], index: 3, kind: input, shape index: {}]   ;;  %s6270_s4 = inlined_call_operand.vmem [shape: bf16[3,3,8,8], index: 4, kind: input, shape index: {}]   ;;  %s6271_s5 = inlined_call_operand.vmem [shape: f32[1,8], index: 5, kind: input, shape index: {}]   ;;  %s6272_s6 = inlined_call_operand.vmem [shape: f32[1,8], index: 6, kind: input, shape index: {}]   ;;  %s6273_s7 = inlined_call_operand.vmem [shape: f32[2,8,8,8], index: 7, kind: output, shape index: {}]  }
   0x1 LB: > { %s4790_s25 = sadd.s32 4294967295, %s4740_s24   ;;  %p3739_p0 = scmp.ge.s32.totalorder %s4740_s24, 1  ;;  %s4740_s24 = sphi %s4784_s24, %s17_s24  }
   0x2   : > { %p232_p1 = scmp.lt.s32.totalorder %s4740_s24, 3 }
   0x4   : > { %p233_p2 = pnand %p3739_p0, %p232_p1 }
   0x5   : > { %p259_p3 = scmp.lt.s32.totalorder (!%p233_p2), %s4790_s25, 1  ;;  %p3742_p4 = scmp.ne.s32.totalorder (!%p233_p2), %s4790_s25, 0 }
   0x6   : > { %236 = sbr.rel (%p233_p2) target bundleno = 1042 (0x412), region = 48 }
   0xd   : > { %s260_s26 = scalar_select %p259_p3, %s4790_s25, 1 }
   0xe   : > { %268 = sbr.rel (%p3742_p4) target bundleno = 46 (0x2e), region = 52  ;;  %vm269_vm0 = vcmask (!%p3742_p4), 31744   ;;  %vm271_vm1 = vcmask (!%p3742_p4), 25600   ;;  %vm291_vm2 = vcmask (!%p3742_p4), 64512   ;;  %v4742_v0 = vmov (!%p3742_p4), 0.0  }
   0xf   : > { %s4037_s27 = sshll.u32 %s260_s26, 7  ;;  %270 = vst.msk [vmem:[#allocation2] sm:$0xff] (!%p3742_p4), %vm269_vm0, %v4742_v0  ;;  %273 = vst.msk [vmem:[#allocation2 + $0x10] sm:$0xff] (!%p3742_p4), %vm269_vm0, %v4742_v0  ;;  %vm293_vm3 = vcmask (!%p3742_p4), 58368   ;;  %vm333_vm4 = vcmask (!%p3742_p4), 57344  }
  0x10   : > { %s4799_s30 = scalar_lea.vmem %s6266_s0, %s4037_s27  ;;  %275 = vst.msk [vmem:[#allocation2 + $0x20] sm:$0xff] (!%p3742_p4), %vm269_vm0, %v4742_v0  ;;  %277 = vst.msk [vmem:[#allocation2 + $0x30] sm:$0xff] (!%p3742_p4), %vm269_vm0, %v4742_v0 }
  0x11   : > { %279 = vst.msk [vmem:[#allocation2 + $0x40] sm:$0xff] (!%p3742_p4), %vm269_vm0, %v4742_v0  ;;  %281 = vst.msk [vmem:[#allocation2 + $0x50] sm:$0xff] (!%p3742_p4), %vm269_vm0, %v4742_v0 }
  0x12   : > { %283 = vst.msk [vmem:[#allocation2 + $0x60] sm:$0xff] (!%p3742_p4), %vm269_vm0, %v4742_v0  ;;  %285 = vst.msk [vmem:[#allocation2 + $0x70] sm:$0xff] (!%p3742_p4), %vm269_vm0, %v4742_v0 }
  0x13   : > { %287 = vst.msk [vmem:[#allocation2 + $0x80] sm:$0xff] (!%p3742_p4), %vm269_vm0, %v4742_v0  ;;  %289 = vst.msk [vmem:[#allocation2 + $0x90] sm:$0xff] (!%p3742_p4), %vm269_vm0, %v4742_v0 }
  0x14   : > { %272 = vst.msk [vmem:[#allocation2 + $0x8] sm:$0x3] (!%p3742_p4), %vm271_vm1, %v4742_v0  ;;  %274 = vst.msk [vmem:[#allocation2 + $0x18] sm:$0x3] (!%p3742_p4), %vm271_vm1, %v4742_v0 }
  0x15   : > { %276 = vst.msk [vmem:[#allocation2 + $0x28] sm:$0x3] %vm271_vm1, %v4742_v0  ;;  %278 = vst.msk [vmem:[#allocation2 + $0x38] sm:$0x3] %vm271_vm1, %v4742_v0 }
  0x16   : > { %280 = vst.msk [vmem:[#allocation2 + $0x48] sm:$0x3] %vm271_vm1, %v4742_v0  ;;  %282 = vst.msk [vmem:[#allocation2 + $0x58] sm:$0x3] %vm271_vm1, %v4742_v0 }
  0x17   : > { %284 = vst.msk [vmem:[#allocation2 + $0x68] sm:$0x3] %vm271_vm1, %v4742_v0  ;;  %286 = vst.msk [vmem:[#allocation2 + $0x78] sm:$0x3] %vm271_vm1, %v4742_v0 }
  0x18   : > { %288 = vst.msk [vmem:[#allocation2 + $0x88] sm:$0x3] %vm271_vm1, %v4742_v0  ;;  %290 = vst.msk [vmem:[#allocation2 + $0x98] sm:$0x3] %vm271_vm1, %v4742_v0 }
  0x19   : > { %292 = vst.msk [vmem:[#allocation3] sm:$0xff] %vm291_vm2, %v4742_v0  ;;  %295 = vst.msk [vmem:[#allocation3 + $0x10] sm:$0xff] %vm291_vm2, %v4742_v0 }
  0x1a   : > { %297 = vst.msk [vmem:[#allocation3 + $0x20] sm:$0xff] %vm291_vm2, %v4742_v0  ;;  %299 = vst.msk [vmem:[#allocation3 + $0x30] sm:$0xff] %vm291_vm2, %v4742_v0 }
  0x1b   : > { %301 = vst.msk [vmem:[#allocation3 + $0x40] sm:$0xff] %vm291_vm2, %v4742_v0  ;;  %303 = vst.msk [vmem:[#allocation3 + $0x50] sm:$0xff] %vm291_vm2, %v4742_v0 }
  0x1c   : > { %305 = vst.msk [vmem:[#allocation3 + $0x60] sm:$0xff] %vm291_vm2, %v4742_v0  ;;  %307 = vst.msk [vmem:[#allocation3 + $0x70] sm:$0xff] %vm291_vm2, %v4742_v0 }
  0x1d   : > { %309 = vst.msk [vmem:[#allocation3 + $0x80] sm:$0xff] %vm291_vm2, %v4742_v0  ;;  %311 = vst.msk [vmem:[#allocation3 + $0x90] sm:$0xff] %vm291_vm2, %v4742_v0 }
  0x1e   : > { %313 = vst.msk [vmem:[#allocation3 + $0xa0] sm:$0xff] %vm291_vm2, %v4742_v0  ;;  %315 = vst.msk [vmem:[#allocation3 + $0xb0] sm:$0xff] %vm291_vm2, %v4742_v0 }
  0x1f   : > { %317 = vst.msk [vmem:[#allocation3 + $0xc0] sm:$0xff] %vm291_vm2, %v4742_v0  ;;  %319 = vst.msk [vmem:[#allocation3 + $0xd0] sm:$0xff] %vm291_vm2, %v4742_v0 }
  0x20   : > { %321 = vst.msk [vmem:[#allocation3 + $0xe0] sm:$0xff] %vm291_vm2, %v4742_v0  ;;  %323 = vst.msk [vmem:[#allocation3 + $0xf0] sm:$0xff] %vm291_vm2, %v4742_v0 }
  0x21   : > { %325 = vst.msk [vmem:[#allocation3 + $0x100] sm:$0xff] %vm291_vm2, %v4742_v0  ;;  %327 = vst.msk [vmem:[#allocation3 + $0x110] sm:$0xff] %vm291_vm2, %v4742_v0 }
  0x22   : > { %329 = vst.msk [vmem:[#allocation3 + $0x120] sm:$0xff] %vm291_vm2, %v4742_v0  ;;  %331 = vst.msk [vmem:[#allocation3 + $0x130] sm:$0xff] %vm291_vm2, %v4742_v0 }
  0x23   : > { %294 = vst.msk [vmem:[#allocation3 + $0x8] sm:$0x3] %vm293_vm3, %v4742_v0  ;;  %296 = vst.msk [vmem:[#allocation3 + $0x18] sm:$0x3] %vm293_vm3, %v4742_v0 }
  0x24   : > { %298 = vst.msk [vmem:[#allocation3 + $0x28] sm:$0x3] %vm293_vm3, %v4742_v0  ;;  %300 = vst.msk [vmem:[#allocation3 + $0x38] sm:$0x3] %vm293_vm3, %v4742_v0 }
  0x25   : > { %302 = vst.msk [vmem:[#allocation3 + $0x48] sm:$0x3] %vm293_vm3, %v4742_v0  ;;  %304 = vst.msk [vmem:[#allocation3 + $0x58] sm:$0x3] %vm293_vm3, %v4742_v0 }
  0x26   : > { %306 = vst.msk [vmem:[#allocation3 + $0x68] sm:$0x3] %vm293_vm3, %v4742_v0  ;;  %308 = vst.msk [vmem:[#allocation3 + $0x78] sm:$0x3] %vm293_vm3, %v4742_v0 }
  0x27   : > { %310 = vst.msk [vmem:[#allocation3 + $0x88] sm:$0x3] %vm293_vm3, %v4742_v0  ;;  %312 = vst.msk [vmem:[#allocation3 + $0x98] sm:$0x3] %vm293_vm3, %v4742_v0 }
  0x28   : > { %314 = vst.msk [vmem:[#allocation3 + $0xa8] sm:$0x3] %vm293_vm3, %v4742_v0  ;;  %316 = vst.msk [vmem:[#allocation3 + $0xb8] sm:$0x3] %vm293_vm3, %v4742_v0 }
  0x29   : > { %318 = vst.msk [vmem:[#allocation3 + $0xc8] sm:$0x3] %vm293_vm3, %v4742_v0  ;;  %320 = vst.msk [vmem:[#allocation3 + $0xd8] sm:$0x3] %vm293_vm3, %v4742_v0 }
  0x2a   : > { %322 = vst.msk [vmem:[#allocation3 + $0xe8] sm:$0x3] %vm293_vm3, %v4742_v0  ;;  %324 = vst.msk [vmem:[#allocation3 + $0xf8] sm:$0x3] %vm293_vm3, %v4742_v0 }
  0x2b   : > { %326 = vst.msk [vmem:[#allocation3 + $0x108] sm:$0x3] %vm293_vm3, %v4742_v0  ;;  %328 = vst.msk [vmem:[#allocation3 + $0x118] sm:$0x3] %vm293_vm3, %v4742_v0 }
  0x2c   : > { %330 = vst.msk [vmem:[#allocation3 + $0x128] sm:$0x3] %vm293_vm3, %v4742_v0  ;;  %332 = vst.msk [vmem:[#allocation3 + $0x138] sm:$0x3] %vm293_vm3, %v4742_v0 }
  0x2d   : > { %334 = vst.msk [vmem:[#allocation4] sm:$0x1] %vm333_vm4, %v4742_v0  ;;  %335 = vst.msk [vmem:[#allocation5] sm:$0x1] %vm333_vm4, %v4742_v0 }
  0x2e PF: > { %v340_v1 = vld [vmem:[%s4799_s30 + $0x20] sm:$0xff]  ;;  %v341_v2 = vld [vmem:[%s4799_s30 + $0x28] sm:$0xff]  ;;  %v342_v6 = vld [vmem:[%s4799_s30 + $0x30] sm:$0xff]  ;;  %s4743_s8 = smov 124   ;;  %vm628_vm5 = vcmask 1041408   ;;  %vm401_vm6 = vcmask 31744  }
  0x2f   : > { %v336_v3 = vld [vmem:[%s4799_s30] sm:$0xff]  ;;  %v354_v4 = vmax.f32 %v340_v1, %v341_v2  ;;  %v337_v5 = vld [vmem:[%s4799_s30 + $0x8] sm:$0xff]  ;;  %v343_v7 = vld [vmem:[%s4799_s30 + $0x38] sm:$0xff]  ;;  %vm489_vm7 = vsmask.f32 3328  ;;  %vm781_vm10 = vcmask 1042432  }
  0x30   : > { %v352_v8 = vmax.f32 %v336_v3, %v337_v5  ;;  %v338_v9 = vld [vmem:[%s4799_s30 + $0x10] sm:$0xff]  ;;  %v339_v10 = vld [vmem:[%s4799_s30 + $0x18] sm:$0xff]  ;;  %v355_v11 = vmax.f32 %v342_v6, %v343_v7  ;;  %v344_v15 = vld [vmem:[%s4799_s30 + $0x40] sm:$0xff]  ;;  %vm490_vm8 = vsmask.f32 7440  ;;  %vm782_vm11 = vcmask 1046532  }
  0x31   : > { %372 = vrot.lane.b32.xlu1 %v354_v4, %s4743_s8  ;;  %v353_v12 = vmax.f32 %v338_v9, %v339_v10  ;;  %v346_v13 = vld [vmem:[%s4799_s30 + $0x50] sm:$0xff]  ;;  %v347_v14 = vld [vmem:[%s4799_s30 + $0x58] sm:$0xff]  ;;  %v345_v16 = vld [vmem:[%s4799_s30 + $0x48] sm:$0xff]  ;;  %s3722_s29 = smul.u32 160, %s4790_s25  ;;  %vm1485_vm13 = vcmask 64512   ;;  %vm1517_vm14 = vcmask 57344  }
  0x32   : > { %368 = vrot.lane.b32.xlu0 %v352_v8, %s4743_s8  ;;  %v441_v17 = vld [vmem:[%s6267_s1 + $0x2] sm:$0x3]  ;;  %v357_v18 = vmax.f32 %v346_v13, %v347_v14  ;;  %v356_v19 = vmax.f32 %v344_v15, %v345_v16  ;;  %v350_v20 = vld [vmem:[%s4799_s30 + $0x70] sm:$0xff]  ;;  %v351_v21 = vld [vmem:[%s4799_s30 + $0x78] sm:$0xff]  ;;  %p3844_p5 = scmp.ne.s32.totalorder %s4790_s25, 1 }
  0x33   : > { %4699 = vmatprep.subr.msk.bf16.mxu1 %vm628_vm5, %v441_v17  ;;  %v348_v22 = vld [vmem:[%s4799_s30 + $0x60] sm:$0xff]  ;;  %v349_v23 = vld [vmem:[%s4799_s30 + $0x68] sm:$0xff]  ;;  %v4936_v24 = vmax.f32 %v350_v20, %v351_v21  ;;  %v630_v27 = vsel %vm628_vm5, %v441_v17, 0  ;;  %vm5006_vm9 = vmor %vm489_vm7, %vm490_vm8  ;;  %s5268_s30 = scalar_lea.vmem [#allocation3], %s3722_s29 }
  0x34   : > { %v4938_v25 = vmax.f32 %v348_v22, %v349_v23  ;;  %v4943_v26 = vld [vmem:[%s6267_s1 + $0x8] sm:$0x3]  ;;  %4252 = vmatpush3.bf16.msra.mxu1 %v630_v27  ;;  %v4958_v29 = vld [vmem:[%s6267_s1] sm:$0x3]  ;;  %v4963_v30 = vld [vmem:[%s6267_s1 + $0xa] sm:$0x3] }
  0x35   : > { %374 = vrot.lane.b32.xlu1 %v355_v11, %s4743_s8  ;;  %4703 = vmatprep.subr.msk.bf16.mxu0 %vm628_vm5, %v4943_v26  ;;  %v4951_v28 = vsel %vm628_vm5, %v4943_v26, 0  ;;  %v4969_v31 = vld [vmem:[#allocation2] sm:$0xff]  ;;  %v411_v39 = vld [vmem:[#allocation2 + $0x8] sm:$0x3]  ;;  %vm5048_vm12 = vmor %vm781_vm10, %vm782_vm11 }
  0x36   : > { %370 = vrot.lane.b32.xlu0 %v353_v12, %s4743_s8  ;;  %4292 = vmatpush3.bf16.msra.mxu0 %v4951_v28  ;;  %v4973_v32 = vpack.c.bf16 %v4969_v31, %v4969_v31  ;;  %v4979_v46 = vpack.c.bf16 %v411_v39, %v411_v39 }
  0x37   : > { %4700 = vmatprep.subr.msk.bf16.mxu1 %vm628_vm5, %v4958_v29  ;;  %4705 = vmatprep.subr.msk.bf16.mxu0 %vm628_vm5, %v4963_v30 }
  0x38   : > { %v493_v36 = vshrl.u32 %v4973_v32, 16  ;;  %v496_v37 = vshll.u32 %v4973_v32, 16  ;;  %v502_v48 = vshll.u32 %v4979_v46, 16 }
  0x39   : > { %378 = vrot.lane.b32.xlu1 %v357_v18, %s4743_s8 }
  0x3a   : > { %376 = vrot.lane.b32.xlu0 %v356_v19, %s4743_s8  ;;  %v495_v43 = vrot.slane %v493_v36, 4  ;;  %v498_v44 = vrot.slane %v496_v37, 5  ;;  %v504_v61 = vrot.slane %v502_v48, 5 }
  0x3c   : > { %v499_v51 = vor.u32 %v498_v44, %v495_v43 }
  0x3d   : > { %382 = vrot.lane.b32.xlu1 %v4936_v24, %s4743_s8 }
  0x3e   : > { %380 = vrot.lane.b32.xlu0 %v4938_v25, %s4743_s8  ;;  %v500_v0 = vrot.slane %v499_v51, 4 }
  0xa3   : > { %v373_v33 = vpop.permute.xlu1 %372 }
  0xa4   : > { %v394_v34 = vmax.f32 %v354_v4, %v373_v33  ;;  %v369_v35 = vpop.permute.xlu0 %368 }
  0xa5   : > { %v392_v38 = vmax.f32 %v352_v8, %v369_v35 }
  0xa6   : > { %404 = vst.msk [vmem:[#allocation2 + $0x31] sm:$0xff] %vm401_vm6, %v394_v34 }
  0xa7   : > { %402 = vst.msk [vmem:[#allocation2 + $0x11] sm:$0xff] %vm401_vm6, %v392_v38  ;;  %v375_v40 = vpop.permute.xlu1 %374 }
  0xa8   : > { %v395_v41 = vmax.f32 %v355_v11, %v375_v40  ;;  %v371_v42 = vpop.permute.xlu0 %370 }
  0xa9   : > { %v393_v45 = vmax.f32 %v353_v12, %v371_v42 }
  0xaa   : > { %405 = vst.msk [vmem:[#allocation2 + $0x41] sm:$0xff] %vm401_vm6, %v395_v41  ;;  %v714_v41 = vsel %vm628_vm5, %v4958_v29, 0 }
  0xab   : > { %403 = vst.msk [vmem:[#allocation2 + $0x21] sm:$0xff] %vm401_vm6, %v393_v45  ;;  %v379_v47 = vpop.permute.xlu1 %378 }
  0xac   : > { %v397_v49 = vmax.f32 %v357_v18, %v379_v47  ;;  %v377_v50 = vpop.permute.xlu0 %376 }
  0xad   : > { %v396_v52 = vmax.f32 %v356_v19, %v377_v50  ;;  %v4984_v53 = vld [vmem:[#allocation2 + $0x30] sm:$0xff]  ;;  %v417_v56 = vld [vmem:[#allocation2 + $0x38] sm:$0x3]  ;;  %v505_v19 = vsel %vm5006_vm9, %v500_v0, %v504_v61 }
  0xae   : > { %407 = vst.msk [vmem:[#allocation2 + $0x61] sm:$0xff] %vm401_vm6, %v397_v49  ;;  %v4987_v54 = vld [vmem:[#allocation2 + $0x10] sm:$0xff]  ;;  %v413_v55 = vld [vmem:[#allocation2 + $0x18] sm:$0x3]  ;;  %v4991_v57 = vpack.c.bf16 %v4984_v53, %v4984_v53  ;;  %v5012_v7 = vpack.c.bf16 %v417_v56, %v417_v56 }
  0xaf   : > { %406 = vst.msk [vmem:[#allocation2 + $0x51] sm:$0xff] %vm401_vm6, %v396_v52  ;;  %v383_v58 = vpop.permute.xlu1 %382  ;;  %v4996_v59 = vpack.c.bf16 %v4987_v54, %v4987_v54  ;;  %v4998_v60 = vpack.c.bf16 %v413_v55, %v413_v55 }
  0xb0   : > { %v399_v62 = vmax.f32 %v4936_v24, %v383_v58  ;;  %v381_v63 = vpop.permute.xlu0 %380  ;;  %v535_v1 = vshrl.u32 %v4991_v57, 16  ;;  %v538_v2 = vshll.u32 %v4991_v57, 16  ;;  %v544_v35 = vshll.u32 %v5012_v7, 16 }
  0xb1   : > { %v398_v3 = vmax.f32 %v4938_v25, %v381_v63  ;;  %v507_v5 = vshrl.u32 %v4996_v59, 16  ;;  %v510_v6 = vshll.u32 %v4996_v59, 16  ;;  %v5014_v8 = vld [vmem:[#allocation2 + $0x40] sm:$0xff]  ;;  %v419_v9 = vld [vmem:[#allocation2 + $0x48] sm:$0x3]  ;;  %v516_v10 = vshll.u32 %v4998_v60, 16 }
  0xb2   : > { %409 = vst.msk [vmem:[#allocation2 + $0x81] sm:$0xff] %vm401_vm6, %v399_v62  ;;  %v5018_v11 = vld [vmem:[#allocation2 + $0x20] sm:$0xff]  ;;  %v415_v12 = vld [vmem:[#allocation2 + $0x28] sm:$0x3]  ;;  %v537_v13 = vrot.slane %v535_v1, 4  ;;  %v540_v14 = vrot.slane %v538_v2, 5  ;;  %v5022_v15 = vpack.c.bf16 %v5014_v8, %v5014_v8  ;;  %v5029_v22 = vpack.c.bf16 %v419_v9, %v419_v9 }
  0xb3   : > { %408 = vst.msk [vmem:[#allocation2 + $0x71] sm:$0xff] %vm401_vm6, %v398_v3  ;;  %v509_v16 = vrot.slane %v507_v5, 4  ;;  %v512_v17 = vrot.slane %v510_v6, 5  ;;  %v4042_v18 = vpack.c.bf16 %v5018_v11, %v5018_v11  ;;  %v4043_v20 = vpack.c.bf16 %v415_v12, %v415_v12 }
  0xb4   : > { %v541_v21 = vor.u32 %v540_v14, %v537_v13  ;;  %v549_v27 = vshrl.u32 %v5022_v15, 16  ;;  %v518_v33 = vrot.slane %v516_v10, 5  ;;  %v552_v36 = vshll.u32 %v5022_v15, 16 }
  0xb5   : > { %v513_v23 = vor.u32 %v512_v17, %v509_v16  ;;  %v521_v24 = vshrl.u32 %v4042_v18, 16  ;;  %v524_v25 = vshll.u32 %v4042_v18, 16  ;;  %v530_v34 = vshll.u32 %v4043_v20, 16  ;;  %v5066_v6 = vld [vmem:[#allocation2 + $0x60] sm:$0xff]  ;;  %v423_v14 = vld [vmem:[#allocation2 + $0x68] sm:$0x3] }
  0xb6   : > { %v551_v40 = vrot.slane %v549_v27, 4  ;;  %v554_v42 = vrot.slane %v552_v36, 5  ;;  %v558_v43 = vshll.u32 %v5029_v22, 16  ;;  %v542_v47 = vrot.slane %v541_v21, 4  ;;  %v5039_v49 = vld [vmem:[#allocation2 + $0x50] sm:$0xff] }
  0xb7   : > { %v514_v37 = vrot.slane %v513_v23, 4  ;;  %v523_v38 = vrot.slane %v521_v24, 4  ;;  %v526_v39 = vrot.slane %v524_v25, 5  ;;  %v3777_v48 = vrot.slane %v4042_v18, 9  ;;  %v421_v56 = vld [vmem:[#allocation2 + $0x58] sm:$0x3] }
  0xb8   : > { %v790_v51 = vrot.slane %v4998_v60, 5  ;;  %v555_v52 = vor.u32 %v554_v42, %v551_v40  ;;  %v794_v55 = vrot.slane %v4043_v20, 5  ;;  %v532_v29 = vrot.slane %v530_v34, 5  ;;  %v5096_v27 = vld [vmem:[%s6267_s1 + $0x4] sm:$0x3] }
  0xb9   : > { %v519_v44 = vsel %vm5006_vm9, %v514_v37, %v518_v33  ;;  %v527_v45 = vor.u32 %v526_v39, %v523_v38  ;;  %v546_v61 = vrot.slane %v544_v35, 5  ;;  %v3776_v62 = vrot.slane %v4996_v59, 9 }
  0xba   : > { %v3759_v50 = vcombine.low %v505_v19, %v519_v44  ;;  %v556_v63 = vrot.slane %v555_v52, 4  ;;  %v560_v0 = vrot.slane %v558_v43, 5  ;;  %v1142_v1 = vsel %vm628_vm5, %v4963_v30, 0  ;;  %v5073_v16 = vld [vmem:[#allocation2 + $0x70] sm:$0xff]  ;;  %v425_v17 = vld [vmem:[#allocation2 + $0x78] sm:$0x3] }
  0xbb   : > { %v528_v58 = vrot.slane %v527_v45, 4  ;;  %v5054_v60 = vpack.c.bf16 %v5039_v49, %v5039_v49  ;;  %v547_v3 = vsel %vm5006_vm9, %v542_v47, %v546_v61  ;;  %v5062_v5 = vsel %vm5048_vm12, %v3777_v48, %v794_v55  ;;  %v5113_v61 = vld [vmem:[#allocation2 + $0x80] sm:$0xff] }
  0xbc   : > { %4253 = vmatprep.mubr.msk.bf16.mxu1 %vm401_vm6, %v3759_v50  ;;  %v5064_v30 = vpack.c.bf16 %v421_v56, %v421_v56  ;;  %v561_v12 = vsel %vm5006_vm9, %v556_v63, %v560_v0  ;;  %v3778_v13 = vrot.slane %v4991_v57, 9  ;;  %v5077_v19 = vsel %vm5048_vm12, %v3776_v62, %v790_v51 }
  0xbd   : > { %v533_v59 = vsel %vm5006_vm9, %v528_v58, %v532_v29  ;;  %v3802_v18 = vcombine.low %v547_v3, %v561_v12  ;;  %v798_v20 = vrot.slane %v5012_v7, 5  ;;  %v563_v21 = vshrl.u32 %v5054_v60, 16  ;;  %v446_v7 = vld [vmem:[%s6267_s1 + $0xc] sm:$0x3] }
  0xbe   : > { %v5068_v9 = vcombine.low %v533_v59, %v547_v3  ;;  %v3801_v10 = vcombine.low %v519_v44, %v533_v59  ;;  %v3810_v57 = vcombine.low %v5077_v19, %v5062_v5  ;;  %v566_v23 = vshll.u32 %v5054_v60, 16 }
  0xbf   : > { %v572_v24 = vshll.u32 %v5064_v30, 16  ;;  %v4050_v25 = vpack.c.bf16 %v5066_v6, %v5066_v6  ;;  %v565_v33 = vrot.slane %v563_v21, 4  ;;  %v4051_v34 = vpack.c.bf16 %v423_v14, %v423_v14 }
  0xc0   : > { %4254 = vmatmul.mubr.msk.bf16.vlgmr.msra.gmra.mrb[0].mxu1 %vm401_vm6, %v5068_v9  ;;  %4293 = vmatprep.mubr.msk.bf16.mxu0 %vm401_vm6, %v3801_v10  ;;  %v5101_v35 = vpack.c.bf16 %v5073_v16, %v5073_v16  ;;  %v4053_v36 = vpack.c.bf16 %v425_v17, %v425_v17  ;;  %v3779_v37 = vrot.slane %v5022_v15, 9  ;;  %v568_v38 = vrot.slane %v566_v23, 5 }
  0xc1   : > { %4262 = vmatpush3.bf16.msra.mxu1 %v714_v41  ;;  %4294 = vmatmul.mubr.msk.bf16.vlgmr.msra.gmra.mrb[0].mxu0 %vm401_vm6, %v3802_v18  ;;  %v577_v39 = vshrl.u32 %v4050_v25, 16  ;;  %v580_v40 = vshll.u32 %v4050_v25, 16  ;;  %v802_v42 = vrot.slane %v5029_v22, 5  ;;  %v586_v41 = vshll.u32 %v4051_v34, 16 }
  0xc2   : > { %4302 = vmatpush3.bf16.msra.mxu0 %v1142_v1  ;;  %4303 = vmatprep.mubr.msk.bf16.mxu0 %vm401_vm6, %v3810_v57  ;;  %v591_v43 = vshrl.u32 %v5101_v35, 16  ;;  %v594_v44 = vshll.u32 %v5101_v35, 16  ;;  %v569_v45 = vor.u32 %v568_v38, %v565_v33  ;;  %v3780_v48 = vrot.slane %v5054_v60, 9  ;;  %v427_v1 = vld [vmem:[#allocation2 + $0x88] sm:$0x3] }
  0xc3   : > { %4706 = vmatprep.subr.msk.bf16.mxu0 %vm628_vm5, %v446_v7  ;;  %4701 = vmatprep.subr.msk.bf16.mxu1 %vm628_vm5, %v5096_v27  ;;  %v579_v47 = vrot.slane %v577_v39, 4  ;;  %v582_v15 = vrot.slane %v580_v40, 5  ;;  %v574_v50 = vrot.slane %v572_v24, 5  ;;  %v600_v55 = vshll.u32 %v4053_v36, 16 }
  0xc4   : > { %v593_v51 = vrot.slane %v591_v43, 4  ;;  %v596_v52 = vrot.slane %v594_v44, 5  ;;  %v570_v22 = vrot.slane %v569_v45, 4  ;;  %v806_v58 = vrot.slane %v5064_v30, 5  ;;  %v443_v45 = vld [vmem:[%s6267_s1 + $0x6] sm:$0x3] }
  0xc5   : > { %v583_v56 = vor.u32 %v582_v15, %v579_v47  ;;  %v3781_v29 = vrot.slane %v4050_v25, 9  ;;  %v588_v62 = vrot.slane %v586_v41, 5  ;;  %v810_v0 = vrot.slane %v4051_v34, 5 }
  0xc6   : > { %v597_v63 = vor.u32 %v596_v52, %v593_v51  ;;  %v5117_v59 = vsel %vm5048_vm12, %v3779_v37, %v802_v42  ;;  %v5121_v60 = vsel %vm5006_vm9, %v570_v22, %v574_v50  ;;  %v1224_v10 = vsel %vm628_vm5, %v446_v7, 0 }
  0xc7   : > { %v584_v3 = vrot.slane %v583_v56, 4  ;;  %v5125_v30 = vcombine.low %v561_v12, %v5121_v60  ;;  %v602_v17 = vrot.slane %v600_v55, 5  ;;  %v5129_v18 = vpack.c.bf16 %v5113_v61, %v5113_v61 }
  0xc8   : > { %v598_v14 = vrot.slane %v597_v63, 4  ;;  %v799_v21 = vsel %vm5048_vm12, %v3778_v13, %v798_v20  ;;  %v807_v57 = vsel %vm5048_vm12, %v3780_v48, %v806_v58  ;;  %v5137_v23 = vsel %vm5048_vm12, %v3781_v29, %v810_v0 }
  0xc9   : > { %v5139_v24 = vpack.c.bf16 %v427_v1, %v427_v1  ;;  %v3811_v12 = vcombine.low %v799_v21, %v5117_v59  ;;  %4257 = vmatprep.mubr.msk.bf16.mxu1 %vm401_vm6, %v5125_v30  ;;  %v5146_v25 = vsel %vm5006_vm9, %v584_v3, %v588_v62  ;;  %v3782_v20 = vrot.slane %v5101_v35, 9  ;;  %v447_v35 = vld [vmem:[%s6267_s1 + $0xe] sm:$0x3] }
  0xca   : > { %v5150_v13 = vsel %vm5006_vm9, %v598_v14, %v602_v17  ;;  %v814_v33 = vrot.slane %v4053_v36, 5  ;;  %v3809_v34 = vrot.slane %v5129_v18, 9  ;;  %v4054_v38 = vpack.c.bf16 %v4987_v54, %v4969_v31 }
  0xcb   : > { %v5155_v7 = vcombine.low %v5146_v25, %v5150_v13  ;;  %v1122_v37 = vrot.slane %v5139_v24, 5  ;;  %v3812_v39 = vcombine.low %v807_v57, %v5137_v23  ;;  %v4059_v40 = vpack.c.bf16 %v5014_v8, %v4984_v53 }
  0xcc   : > { %v815_v31 = vsel %vm5048_vm12, %v3782_v20, %v814_v33  ;;  %v4055_v41 = vpack.c.bf16 %v4984_v53, %v5018_v11  ;;  %v841_v43 = vsel %vm628_vm5, %v5096_v27, 0  ;;  %v4056_v44 = vpack.c.bf16 %v5039_v49, %v5014_v8  ;;  %v428_v27 = vld [vmem:[#allocation2 + $0x90] sm:$0xff] }
  0xcd   : > { %4304 = vmatmul.mubr.msk.bf16.vlgmr.msra.gmra.mrb[0].mxu0 %vm401_vm6, %v3811_v12  ;;  %4258 = vmatmul.mubr.msk.bf16.gmra.mrb[4].mxu1 %vm401_vm6, %v5155_v7  ;;  %v5176_v36 = vsel %vm5048_vm12, %v3809_v34, %v1122_v37  ;;  %v786_v47 = vrot.slane %v4979_v46, 5  ;;  %v3775_v15 = vrot.slane %v4973_v32, 9  ;;  %v1322_v50 = vsel %vm628_vm5, %v447_v35, 0  ;;  %v448_v32 = vld [vmem:[%s6267_s1 + $0x10] sm:$0x3] }
  0xce   : > { %4312 = vmatpush3.bf16.msra.mxu0 %v1224_v10  ;;  %4263 = vmatprep.mubr.msk.bf16.mxu1 %vm401_vm6, %v4054_v38  ;;  %v3813_v42 = vcombine.low %v815_v31, %v5176_v36  ;;  %v5199_v51 = vpack.c.bf16 %v428_v27, %v428_v27  ;;  %v4057_v46 = vpack.c.bf16 %v5073_v16, %v5066_v6  ;;  %v1014_v56 = vshrl.u32 %v5129_v18, 16 }
  0xcf   : > { %4307 = vmatprep.mubr.msk.bf16.mxu0 %vm401_vm6, %v3812_v39  ;;  %4707 = vmatprep.subr.msk.bf16.mxu0 %vm628_vm5, %v447_v35  ;;  %v787_v48 = vsel %vm5048_vm12, %v3775_v15, %v786_v47  ;;  %v1017_v58 = vshll.u32 %v5129_v18, 16  ;;  %v4064_v29 = vpack.c.bf16 %v428_v27, %v5113_v61  ;;  %v3784_v63 = vcombine.low %v5062_v5, %v799_v21 }
  0xd0   : > { %v3783_v52 = vcombine.low %v787_v48, %v5077_v19  ;;  %v1303_v55 = vshrl.u32 %v5199_v51, 16  ;;  %v1306_v22 = vshll.u32 %v5199_v51, 16  ;;  %v429_v19 = vld [vmem:[#allocation2 + $0x98] sm:$0x3]  ;;  %v935_v0 = vsel %vm628_vm5, %v443_v45, 0 }
  0xd1   : > { %v4066_v3 = vpack.c.bf16 %v429_v19, %v429_v19  ;;  %v3785_v10 = vcombine.low %v5117_v59, %v807_v57  ;;  %v1016_v14 = vrot.slane %v1014_v56, 4  ;;  %v1019_v17 = vrot.slane %v1017_v58, 5 }
  0xd2   : > { %v1305_v62 = vrot.slane %v1303_v55, 4  ;;  %v1308_v1 = vrot.slane %v1306_v22, 5  ;;  %v1023_v59 = vshll.u32 %v5139_v24, 16  ;;  %v1407_v57 = vsel %vm628_vm5, %v448_v32, 0 }
  0xd3   : > { %v1312_v18 = vshll.u32 %v4066_v3, 16  ;;  %v1020_v21 = vor.u32 %v1019_v17, %v1016_v14  ;;  %v3786_v12 = vcombine.low %v5137_v23, %v815_v31 }
  0xd4   : > { %v1309_v5 = vor.u32 %v1308_v1, %v1305_v62  ;;  %v1025_v34 = vrot.slane %v1023_v59, 5 }
  0xd5   : > { %4308 = vmatmul.mubr.msk.bf16.gmra.mrb[4].mxu0 %vm401_vm6, %v3813_v42  ;;  %4264 = vmatmul.mubr.msk.bf16.vlgmr.msra.gmra.mrb[0].mxu1 %vm401_vm6, %v4055_v41  ;;  %v1314_v33 = vrot.slane %v1312_v18, 5 }
  0xd6   : > { %4313 = vmatprep.mubr.msk.bf16.mxu0 %vm401_vm6, %v4055_v41  ;;  %4267 = vmatprep.mubr.msk.bf16.mxu1 %vm401_vm6, %v4056_v44  ;;  %v1310_v20 = vrot.slane %v1309_v5, 4 }
  0xd7   : > { %4272 = vmatpush3.bf16.msra.mxu1 %v841_v43 }
  0xd8   : > { %4702 = vmatprep.subr.msk.bf16.mxu1 %vm628_vm5, %v443_v45  ;;  %v1315_v23 = vsel %vm5006_vm9, %v1310_v20, %v1314_v33 }
  0xdd   : > { %4314 = vmatmul.mubr.msk.bf16.vlgmr.msra.gmra.mrb[0].mxu0 %vm401_vm6, %v4056_v44  ;;  %4268 = vmatmul.mubr.msk.bf16.gmra.mrb[4].mxu1 %vm401_vm6, %v4057_v46 }
  0xde   : > { %4322 = vmatpush3.bf16.msra.mxu0 %v1322_v50  ;;  %4273 = vmatprep.mubr.msk.bf16.mxu1 %vm401_vm6, %v3783_v52 }
  0xdf   : > { %4317 = vmatprep.mubr.msk.bf16.mxu0 %vm401_vm6, %v4057_v46  ;;  %4708 = vmatprep.subr.msk.bf16.mxu0 %vm628_vm5, %v448_v32 }
  0xe5   : > { %4318 = vmatmul.mubr.msk.bf16.gmra.mrb[4].mxu0 %vm401_vm6, %v4064_v29  ;;  %4274 = vmatmul.mubr.msk.bf16.vlgmr.msra.gmra.mrb[0].mxu1 %vm401_vm6, %v3784_v63 }
  0xe6   : > { %4323 = vmatprep.mubr.msk.bf16.mxu0 %vm401_vm6, %v5068_v9  ;;  %4277 = vmatprep.mubr.msk.bf16.mxu1 %vm401_vm6, %v3785_v10  ;;  %v4058_v9 = vpack.c.bf16 %v5018_v11, %v4987_v54  ;;  %v4060_v11 = vpack.c.bf16 %v5066_v6, %v5039_v49  ;;  %v1399_v49 = vrot.slane %v4066_v3, 5  ;;  %v3803_v6 = vcombine.low %v5121_v60, %v5146_v25 }
  0xe7   : > { %4282 = vmatpush3.bf16.msra.mxu1 %v935_v0 }
  0xe8   : > { %4704 = vmatprep.subr.msk.bf16.mxu1 %vm628_vm5, %v4943_v26  ;;  %v1021_v26 = vrot.slane %v1020_v21, 4 }
  0xea   : > { %v1026_v24 = vsel %vm5006_vm9, %v1021_v26, %v1025_v34 }
  0xeb   : > { %v3825_v54 = vcombine.low %v1026_v24, %v1315_v23  ;;  %v3804_v8 = vcombine.low %v5150_v13, %v1026_v24 }
  0xed   : > { %4324 = vmatmul.mubr.msk.bf16.vlgmr.msra.gmra.mrb[0].mxu0 %vm401_vm6, %v5125_v30  ;;  %4278 = vmatmul.mubr.msk.bf16.gmra.mrb[4].mxu1 %vm401_vm6, %v3786_v12  ;;  %v4061_v30 = vpack.c.bf16 %v5113_v61, %v5073_v16 }
  0xee   : > { %4332 = vmatpush3.bf16.msra.mxu0 %v1407_v57  ;;  %4283 = vmatprep.mubr.msk.bf16.mxu1 %vm401_vm6, %v4058_v9 }
  0xef   : > { %4327 = vmatprep.mubr.msk.bf16.mxu0 %vm401_vm6, %v5155_v7  ;;  %v3830_v7 = vrot.slane %v5199_v51, 9 }
  0xf5   : > { %4328 = vmatmul.mubr.msk.bf16.gmra.mrb[4].mxu0 %vm401_vm6, %v3825_v54  ;;  %4284 = vmatmul.mubr.msk.bf16.vlgmr.msra.gmra.mrb[0].mxu1 %vm401_vm6, %v4059_v40 }
  0xf6   : > { %4333 = vmatprep.mubr.msk.bf16.mxu0 %vm401_vm6, %v3784_v63  ;;  %4287 = vmatprep.mubr.msk.bf16.mxu1 %vm401_vm6, %v4060_v11 }
  0xf7   : > { %4504 = vmatpush3.bf16.msra.mxu1 %v4951_v28  ;;  %v1400_v28 = vsel %vm5048_vm12, %v3830_v7, %v1399_v49 }
  0xf8   : > { %v3831_v53 = vcombine.low %v5176_v36, %v1400_v28 }
  0xfd   : > { %4334 = vmatmul.mubr.msk.bf16.vlgmr.msra.gmra.mrb[0].mxu0 %vm401_vm6, %v3785_v10  ;;  %4288 = vmatmul.mubr.msk.bf16.gmra.mrb[4].mxu1 %vm401_vm6, %v4061_v30 }
  0xfe   : > { %4337 = vmatprep.mubr.msk.bf16.mxu0 %vm401_vm6, %v3786_v12  ;;  %4297 = vmatprep.mubr.msk.bf16.mxu1 %vm401_vm6, %v3803_v6 }
 0x105   : > { %4338 = vmatmul.mubr.msk.bf16.gmra.mrb[4].mxu0 %vm401_vm6, %v3831_v53 }
 0x109   : > { %4298 = vmatmul.mubr.msk.bf16.vlgmr.msra.gmra.mrb[4].mxu1 %vm401_vm6, %v3804_v8 }
 0x1c8   : > { %v4285_v16 = vpop.f32.mrb[0].mxu1 }
 0x1c9   : > { %v971_v61 = vpop.f32.mrb[1].mxu1 }
 0x1ca   : > { %v4286_v60 = vpop.f32.mrb[2].mxu1 }
 0x1cb   : > { %v974_v25 = vpop.f32.mrb[3].mxu1 }
 0x1d0   : > { %v4335_v37 = vpop.f32.mrb[0].mxu0 }
 0x1d1   : > { %v4505_v38 = vadd.f32 %v4335_v37, %v4285_v16  ;;  %v1443_v39 = vpop.f32.mrb[1].mxu0 }
 0x1d2   : > { %v4506_v35 = vadd.f32 %v1443_v39, %v971_v61  ;;  %v4336_v40 = vpop.f32.mrb[2].mxu0 }
 0x1d3   : > { %3838 = vst.msk [vmem:[%s5268_s30 + $0x31] sm:$0xff] %vm1485_vm13, %v4505_v38  ;;  %v4507_v13 = vadd.f32 %v4336_v40, %v4286_v60  ;;  %v1446_v31 = vpop.f32.mrb[3].mxu0  ;;  %v1522_v41 = vmul.f32 %v4505_v38, %v4505_v38  ;;  %v1498_v15 = vsel %vm1485_vm13, %v4505_v38, 0.0 }
 0x1d4   : > { %3836 = vst.msk [vmem:[%s5268_s30 + $0x11] sm:$0xff] %vm1485_vm13, %v4506_v35  ;;  %v1520_v36 = vmul.f32 %v4506_v35, %v4506_v35  ;;  %v4508_v42 = vadd.f32 %v1446_v31, %v974_v25  ;;  %v1495_v43 = vsel %vm1485_vm13, %v4506_v35, 0.0 }
 0x1d5   : > { %3839 = vst.msk [vmem:[%s5268_s30 + $0x41] sm:$0xff] %vm1485_vm13, %v4507_v13  ;;  %v1523_v48 = vmul.f32 %v4507_v13, %v4507_v13  ;;  %v1531_v55 = vsel %vm1485_vm13, %v1522_v41, 0.0  ;;  %v1500_v22 = vsel %vm1485_vm13, %v4507_v13, 0.0  ;;  %v1494_v13 = vld [vmem:[#allocation4] sm:$0x1] }
 0x1d6   : > { %3837 = vst.msk [vmem:[%s5268_s30 + $0x21] sm:$0xff] %vm1485_vm13, %v4508_v42  ;;  %v1496_v44 = vsel %vm1485_vm13, %v4508_v42, 0.0  ;;  %v1521_v45 = vmul.f32 %v4508_v42, %v4508_v42  ;;  %v1528_v27 = vsel %vm1485_vm13, %v1520_v36, 0.0  ;;  %v1519_v42 = vld [vmem:[#allocation5] sm:$0x1] }
 0x1d7   : > { %v1497_v47 = vadd.f32 %v1496_v44, %v1495_v43  ;;  %v1533_v62 = vsel %vm1485_vm13, %v1523_v48, 0.0 }
 0x1d8   : > { %v1529_v50 = vsel %vm1485_vm13, %v1521_v45, 0.0  ;;  %v4339_v51 = vpop.f32.mrb[4].mxu0 }
 0x1d9   : > { %v1499_v46 = vadd.f32 %v1498_v15, %v1497_v47  ;;  %v1530_v52 = vadd.f32 %v1529_v50, %v1528_v27  ;;  %v1459_v32 = vpop.f32.mrb[5].mxu0 }
 0x1da   : > { %v4340_v19 = vpop.f32.mrb[6].mxu0 }
 0x1db   : > { %v1532_v56 = vadd.f32 %v1531_v55, %v1530_v52  ;;  %v1501_v58 = vadd.f32 %v1500_v22, %v1499_v46  ;;  %v1462_v29 = vpop.f32.mrb[7].mxu0 }
 0x1dc   : > { %v4299_v63 = vpop.f32.mrb[4].mxu1 }
 0x1dd   : > { %v1534_v0 = vadd.f32 %v1533_v62, %v1532_v56  ;;  %v1097_v1 = vpop.f32.mrb[5].mxu1  ;;  %v4509_v3 = vadd.f32 %v4339_v51, %v4299_v63 }
 0x1de   : > { %v4300_v10 = vpop.f32.mrb[6].mxu1  ;;  %v4510_v14 = vadd.f32 %v1459_v32, %v1097_v1 }
 0x1df   : > { %3842 = vst.msk [vmem:[%s5268_s30 + $0x71] sm:$0xff] %vm1485_vm13, %v4509_v3  ;;  %v1100_v17 = vpop.f32.mrb[7].mxu1  ;;  %v4511_v5 = vadd.f32 %v4340_v19, %v4300_v10  ;;  %v1526_v12 = vmul.f32 %v4509_v3, %v4509_v3  ;;  %v1506_v23 = vsel %vm1485_vm13, %v4509_v3, 0.0 }
 0x1e0   : > { %3840 = vst.msk [vmem:[%s5268_s30 + $0x51] sm:$0xff] %vm1485_vm13, %v4510_v14  ;;  %v1502_v18 = vsel %vm1485_vm13, %v4510_v14, 0.0  ;;  %v1524_v21 = vmul.f32 %v4510_v14, %v4510_v14  ;;  %v4512_v59 = vadd.f32 %v1462_v29, %v1100_v17 }
 0x1e1   : > { %v1503_v57 = vadd.f32 %v1502_v18, %v1501_v58  ;;  %3843 = vst.msk [vmem:[%s5268_s30 + $0x81] sm:$0xff] %vm1485_vm13, %v4511_v5  ;;  %v1527_v24 = vmul.f32 %v4511_v5, %v4511_v5  ;;  %v1539_v7 = vsel %vm1485_vm13, %v1526_v12, 0.0  ;;  %v1508_v49 = vsel %vm1485_vm13, %v4511_v5, 0.0 }
 0x1e2   : > { %v1535_v20 = vsel %vm1485_vm13, %v1524_v21, 0.0  ;;  %3841 = vst.msk [vmem:[%s5268_s30 + $0x61] sm:$0xff] %vm1485_vm13, %v4512_v59  ;;  %v1504_v33 = vsel %vm1485_vm13, %v4512_v59, 0.0  ;;  %v1525_v9 = vmul.f32 %v4512_v59, %v4512_v59 }
 0x1e3   : > { %v1536_v26 = vadd.f32 %v1535_v20, %v1534_v0  ;;  %v1505_v34 = vadd.f32 %v1504_v33, %v1503_v57  ;;  %v1541_v53 = vsel %vm1485_vm13, %v1527_v24, 0.0 }
 0x1e4   : > { %v1537_v54 = vsel %vm1485_vm13, %v1525_v9, 0.0 }
 0x1e5   : > { %v1507_v11 = vadd.f32 %v1506_v23, %v1505_v34  ;;  %v1538_v30 = vadd.f32 %v1537_v54, %v1536_v26 }
 0x1e7   : > { %v1509_v6 = vadd.f32 %v1508_v49, %v1507_v11  ;;  %v1540_v28 = vadd.f32 %v1539_v7, %v1538_v30 }
 0x1e9   : > { %v1510_v8 = vrot.slane %v1509_v6, 4  ;;  %v1542_v16 = vadd.f32 %v1541_v53, %v1540_v28 }
 0x1eb   : > { %v1511_v61 = vadd.f32 %v1510_v8, %v1509_v6  ;;  %v1543_v60 = vrot.slane %v1542_v16, 4 }
 0x1ed   : > { %v1512_v25 = vrot.slane %v1511_v61, 2  ;;  %v1544_v37 = vadd.f32 %v1543_v60, %v1542_v16 }
 0x1ef   : > { %v1513_v38 = vadd.f32 %v1512_v25, %v1511_v61  ;;  %v1545_v39 = vrot.slane %v1544_v37, 2 }
 0x1f1   : > { %v1514_v35 = vrot.slane %v1513_v38, 1  ;;  %v1546_v40 = vadd.f32 %v1545_v39, %v1544_v37 }
 0x1f3   : > { %v1515_v31 = vadd.f32 %v1514_v35, %v1513_v38  ;;  %v1547_v36 = vrot.slane %v1546_v40, 1  ;;  %1554 = sbr.rel (%p3844_p5) target bundleno = 1042 (0x412), region = 56 }
 0x1f5   : > { %v1516_v41 = vadd.f32 %v1515_v31, %v1494_v13  ;;  %v1548_v43 = vadd.f32 %v1547_v36, %v1546_v40 }
 0x1f7   : > { %1518 = vst.msk [vmem:[#allocation4] sm:$0x1] %vm1517_vm14, %v1516_v41  ;;  %v1549_v44 = vadd.f32 %v1548_v43, %v1519_v42 }
 0x1f9   : > { %1550 = vst.msk [vmem:[#allocation5] sm:$0x1] %vm1517_vm14, %v1549_v44 }
 0x1fa   : > { %v1763_v45 = vld [vmem:[%s6270_s4 + $0x4] sm:$0xf]  ;;  %vm2123_vm15 = vcmask 1043456   ;;  %v1766_v47 = vld [vmem:[%s6270_s4 + $0x10] sm:$0xf]  ;;  %v1581_v15 = vlaneseq }
 0x1fb   : > { %4709 = vmatprep.subr.msk.bf16.mxu1 %vm2123_vm15, %v1763_v45  ;;  %4713 = vmatprep.subr.msk.bf16.mxu0 %vm2123_vm15, %v1766_v47  ;;  %v2125_v27 = vsel %vm2123_vm15, %v1763_v45, 0  ;;  %v5313_v48 = vsel %vm2123_vm15, %v1766_v47, 0  ;;  %v5316_v32 = vld [vmem:[#allocation3] sm:$0xff]  ;;  %v1703_v56 = vld [vmem:[#allocation3 + $0x8] sm:$0x3]  ;;  %v1562_v12 = vld [vmem:[#allocation3 + $0x11] sm:$0xff] }
 0x1fc   : > { %6291 = vst [vmem:[#allocation6_spill] sm:$0xff] %v5313_v48  ;;  %4342 = vmatpush3.bf16.msra.mxu1 %v2125_v27  ;;  %4414 = vmatpush3.bf16.msra.mxu0 %v5313_v48  ;;  %v1762_v55 = vld [vmem:[%s6270_s4] sm:$0xf]  ;;  %v5321_v19 = vshrl.u32 %v1581_v15, 7  ;;  %v4067_v58 = vpack.c.bf16 %v5316_v32, %v5316_v32  ;;  %v1767_v29 = vld [vmem:[%s6270_s4 + $0x14] sm:$0xf]  ;;  %v4068_v63 = vpack.c.bf16 %v1703_v56, %v1703_v56 }
 0x1fd   : > { %4710 = vmatprep.subr.msk.bf16.mxu1 %vm2123_vm15, %v1762_v55  ;;  %4715 = vmatprep.subr.msk.bf16.mxu0 %vm2123_vm15, %v1767_v29  ;;  %v5331_v14 = vld [vmem:[#allocation3 + $0xa0] sm:$0xff]  ;;  %v1723_v5 = vld [vmem:[#allocation3 + $0xa8] sm:$0x3]  ;;  %v1564_v33 = vld [vmem:[#allocation3 + $0x31] sm:$0xff]  ;;  %v5338_v34 = vsel %vm2123_vm15, %v1762_v55, 0  ;;  %v5341_v24 = vsel %vm2123_vm15, %v1767_v29, 0 }
 0x1fe   : > { %v1555_v50 = vld [vmem:[#allocation4] sm:$0x1]  ;;  %v1583_v0 = vsub.s32 0, %v5321_v19  ;;  %v1852_v3 = vshrl.u32 %v4067_v58, 16  ;;  %v1855_v10 = vshll.u32 %v4067_v58, 16  ;;  %v1861_v17 = vshll.u32 %v4068_v63, 16 }
 0x1ff   : > { %v1556_v46 = vmul.f32 0.0078125, %v1555_v50  ;;  %v4083_v18 = vpack.c.bf16 %v5331_v14, %v5331_v14  ;;  %v1563_v20 = vld [vmem:[#allocation3 + $0x21] sm:$0xff]  ;;  %v1566_v54 = vld [vmem:[#allocation3 + $0x51] sm:$0xff]  ;;  %v4084_v30 = vpack.c.bf16 %v1723_v5, %v1723_v5  ;;  %v3911_v28 = vrot.slane %v4067_v58, 9 }
 0x200   : > { %v1557_v51 = vld [vmem:[#allocation5] sm:$0x1]  ;;  %v1854_v59 = vrot.slane %v1852_v3, 4  ;;  %v1857_v57 = vrot.slane %v1855_v10, 5  ;;  %v5343_v7 = vrot.slane %v1861_v17, 5  ;;  %v1568_v60 = vld [vmem:[#allocation3 + $0x71] sm:$0xff] }
 0x201   : > { %v1558_v52 = vmul.f32 0.0078125, %v1557_v51  ;;  %v1559_v22 = vmul.f32 %v1556_v46, %v1556_v46  ;;  %v5335_v21 = vrot.slane %v1556_v46, %v1583_v0  ;;  %v1964_v9 = vshrl.u32 %v4083_v18, 16  ;;  %v1565_v23 = vld [vmem:[#allocation3 + $0x41] sm:$0xff]  ;;  %v5348_v37 = vld [vmem:[#allocation3 + $0xb1] sm:$0xff]  ;;  %v3845_v3 = vld [vmem:[%s6268_s2] ss:$0 sm:$0xff] }
 0x202   : > { %v1967_v26 = vshll.u32 %v4083_v18, 16  ;;  %v1567_v11 = vld [vmem:[#allocation3 + $0x61] sm:$0xff]  ;;  %v1858_v8 = vor.u32 %v1857_v57, %v1854_v59  ;;  %v5355_v13 = vld [vmem:[#allocation3 + $0xd1] sm:$0xff]  ;;  %v2358_v31 = vrot.slane %v4068_v63, 5  ;;  %v1973_v42 = vshll.u32 %v4084_v30, 16 }
 0x203   : > { %v1560_v62 = vsub.f32 %v1558_v52, %v1559_v22  ;;  %v1966_v49 = vrot.slane %v1964_v9, 4  ;;  %v1586_v53 = vsub.f32 %v1562_v12, %v5335_v21  ;;  %v1587_v16 = vsub.f32 %v1563_v20, %v5335_v21  ;;  %v1569_v25 = vld [vmem:[#allocation3 + $0x81] sm:$0xff]  ;;  %v5359_v43 = vld [vmem:[#allocation3 + $0xf1] sm:$0xff]  ;;  %v3846_v20 = vld [vmem:[%s6269_s3] ss:$0 sm:$0xff] }
 0x204   : > { %v1969_v6 = vrot.slane %v1967_v26, 5  ;;  %v1588_v61 = vsub.f32 %v1564_v33, %v5335_v21  ;;  %v1589_v38 = vsub.f32 %v1565_v23, %v5335_v21  ;;  %v1590_v39 = vsub.f32 %v1566_v54, %v5335_v21  ;;  %v5353_v40 = vld [vmem:[#allocation3 + $0xc1] sm:$0xff]  ;;  %v5367_v51 = vld [vmem:[#allocation3 + $0x111] sm:$0xff] }
 0x205   : > { %v1602_v1 = vadd.f32 1e-05, %v1560_v62  ;;  %v1591_v35 = vsub.f32 %v1567_v11, %v5335_v21  ;;  %v5357_v41 = vld [vmem:[#allocation3 + $0xe1] sm:$0xff]  ;;  %v3919_v45 = vrot.slane %v4083_v18, 9  ;;  %v2390_v47 = vrot.slane %v4084_v30, 5 }
 0x206   : > { %v1970_v36 = vor.u32 %v1969_v6, %v1966_v49  ;;  %v5361_v44 = vld [vmem:[#allocation3 + $0x101] sm:$0xff]  ;;  %v1592_v15 = vsub.f32 %v1568_v60, %v5335_v21  ;;  %v1593_v27 = vsub.f32 %v1569_v25, %v5335_v21  ;;  %v1594_v50 = vsub.f32 %v5348_v37, %v5335_v21 }
 0x207   : > { %4729 = vrsqrt.f32 %v1602_v1  ;;  %v5369_v46 = vld [vmem:[#allocation3 + $0x121] sm:$0xff]  ;;  %v5373_v52 = vsel %vm5048_vm12, %v3911_v28, %v2358_v31  ;;  %v5375_v22 = vrot.slane %v1858_v8, 4  ;;  %v1595_v19 = vsub.f32 %v5353_v40, %v5335_v21 }
 0x208   : > { %v1596_v56 = vsub.f32 %v5355_v13, %v5335_v21  ;;  %v5383_v58 = vsel %vm5048_vm12, %v3919_v45, %v2390_v47  ;;  %v1597_v62 = vsub.f32 %v5357_v41, %v5335_v21  ;;  %v1598_v63 = vsub.f32 %v5359_v43, %v5335_v21 }
 0x209   : > { %6292 = vst [vmem:[#allocation7_spill] sm:$0xff] %v5383_v58  ;;  %v1599_v1 = vsub.f32 %v5361_v44, %v5335_v21  ;;  %v5394_v10 = vrot.slane %v1970_v36, 4  ;;  %v5396_v17 = vrot.slane %v1973_v42, 5  ;;  %v1601_v5 = vsub.f32 %v5369_v46, %v5335_v21 }
 0x211   : > { %v4730_v55 = vpop.eup %4729 }
 0x212   : > { %v1608_v29 = vrot.slane %v4730_v55, %v1583_v0  ;;  %v1600_v0 = vsub.f32 %v5367_v51, %v5335_v21 }
 0x214   : > { %v1610_v18 = vmul.f32 %v1608_v29, %v1586_v53  ;;  %v1611_v59 = vmul.f32 %v1608_v29, %v1587_v16  ;;  %v1612_v57 = vmul.f32 %v1608_v29, %v1588_v61  ;;  %v1613_v12 = vmul.f32 %v1608_v29, %v1589_v38 }
 0x215   : > { %v1614_v33 = vmul.f32 %v1608_v29, %v1590_v39  ;;  %v1615_v9 = vmul.f32 %v1608_v29, %v1591_v35  ;;  %v1616_v26 = vmul.f32 %v1608_v29, %v1592_v15  ;;  %v1617_v23 = vmul.f32 %v1608_v29, %v1593_v27 }
 0x216   : > { %v1632_v54 = vmul.f32 %v3845_v3, %v1610_v18  ;;  %v1633_v11 = vmul.f32 %v3845_v3, %v1611_v59  ;;  %v1634_v30 = vmul.f32 %v3845_v3, %v1612_v57  ;;  %v1635_v49 = vmul.f32 %v3845_v3, %v1613_v12 }
 0x217   : > { %v1636_v6 = vmul.f32 %v3845_v3, %v1614_v33  ;;  %v1637_v28 = vmul.f32 %v3845_v3, %v1615_v9  ;;  %v1638_v8 = vmul.f32 %v3845_v3, %v1616_v26  ;;  %v1639_v21 = vmul.f32 %v3845_v3, %v1617_v23 }
 0x218   : > { %v1654_v53 = vadd.f32 %v3846_v20, %v1632_v54  ;;  %v1655_v16 = vadd.f32 %v3846_v20, %v1633_v11  ;;  %v1656_v61 = vadd.f32 %v3846_v20, %v1634_v30  ;;  %v1657_v60 = vadd.f32 %v3846_v20, %v1635_v49 }
 0x219   : > { %v1658_v25 = vadd.f32 %v3846_v20, %v1636_v6  ;;  %v1659_v37 = vadd.f32 %v3846_v20, %v1637_v28  ;;  %v1660_v38 = vadd.f32 %v3846_v20, %v1638_v8  ;;  %v1661_v40 = vadd.f32 %v3846_v20, %v1639_v21 }
 0x21a   : > { %v1670_v39 = vmax.f32 %v1654_v53, 0.0  ;;  %v1671_v35 = vmax.f32 %v1655_v16, 0.0  ;;  %v1672_v13 = vmax.f32 %v1656_v61, 0.0  ;;  %v1673_v31 = vmax.f32 %v1657_v60, 0.0 }
 0x21b   : > { %v1674_v36 = vmax.f32 %v1658_v25, 0.0  ;;  %v1675_v42 = vmax.f32 %v1659_v37, 0.0  ;;  %v1676_v41 = vmax.f32 %v1660_v38, 0.0  ;;  %v1677_v43 = vmax.f32 %v1661_v40, 0.0 }
 0x21c   : > { %1686 = vst.msk [vmem:[#allocation3 + $0x11] sm:$0xff] %vm1485_vm13, %v1670_v39  ;;  %1687 = vst.msk [vmem:[#allocation3 + $0x21] sm:$0xff] %vm1485_vm13, %v1671_v35  ;;  %v1618_v44 = vmul.f32 %v1608_v29, %v1594_v50  ;;  %v1619_v45 = vmul.f32 %v1608_v29, %v1595_v19  ;;  %v1620_v47 = vmul.f32 %v1608_v29, %v1596_v56 }
 0x21d   : > { %1688 = vst.msk [vmem:[#allocation3 + $0x31] sm:$0xff] %vm1485_vm13, %v1672_v13  ;;  %1689 = vst.msk [vmem:[#allocation3 + $0x41] sm:$0xff] %vm1485_vm13, %v1673_v31  ;;  %v1621_v15 = vmul.f32 %v1608_v29, %v1597_v62  ;;  %v1622_v27 = vmul.f32 %v1608_v29, %v1598_v63  ;;  %v1623_v51 = vmul.f32 %v1608_v29, %v1599_v1 }
 0x21e   : > { %1690 = vst.msk [vmem:[#allocation3 + $0x51] sm:$0xff] %vm1485_vm13, %v1674_v36  ;;  %1691 = vst.msk [vmem:[#allocation3 + $0x61] sm:$0xff] %vm1485_vm13, %v1675_v42  ;;  %v1624_v46 = vmul.f32 %v1608_v29, %v1600_v0  ;;  %v1625_v55 = vmul.f32 %v1608_v29, %v1601_v5  ;;  %v1640_v18 = vmul.f32 %v3845_v3, %v1618_v44 }
 0x21f   : > { %1692 = vst.msk [vmem:[#allocation3 + $0x71] sm:$0xff] %vm1485_vm13, %v1676_v41  ;;  %1693 = vst.msk [vmem:[#allocation3 + $0x81] sm:$0xff] %vm1485_vm13, %v1677_v43  ;;  %v1641_v59 = vmul.f32 %v3845_v3, %v1619_v45  ;;  %v1642_v57 = vmul.f32 %v3845_v3, %v1620_v47  ;;  %v1643_v12 = vmul.f32 %v3845_v3, %v1621_v15 }
 0x220   : > { %v1644_v50 = vmul.f32 %v3845_v3, %v1622_v27  ;;  %v1645_v19 = vmul.f32 %v3845_v3, %v1623_v51  ;;  %v1646_v56 = vmul.f32 %v3845_v3, %v1624_v46  ;;  %v1647_v62 = vmul.f32 %v3845_v3, %v1625_v55 }
 0x221   : > { %v1662_v33 = vadd.f32 %v3846_v20, %v1640_v18  ;;  %v1663_v9 = vadd.f32 %v3846_v20, %v1641_v59  ;;  %v1664_v26 = vadd.f32 %v3846_v20, %v1642_v57  ;;  %v1665_v23 = vadd.f32 %v3846_v20, %v1643_v12 }
 0x222   : > { %v1666_v54 = vadd.f32 %v3846_v20, %v1644_v50  ;;  %v1667_v11 = vadd.f32 %v3846_v20, %v1645_v19  ;;  %v1668_v30 = vadd.f32 %v3846_v20, %v1646_v56  ;;  %v5413_v49 = vadd.f32 %v3846_v20, %v1647_v62 }
 0x223   : > { %v1678_v63 = vmax.f32 %v1662_v33, 0.0  ;;  %v1679_v1 = vmax.f32 %v1663_v9, 0.0  ;;  %v1680_v29 = vmax.f32 %v1664_v26, 0.0  ;;  %v1681_v0 = vmax.f32 %v1665_v23, 0.0  ;;  %v5415_v5 = vld [vmem:[#allocation3 + $0x10] sm:$0xff]  ;;  %v5421_v28 = vld [vmem:[#allocation3 + $0x20] sm:$0xff] }
 0x224   : > { %v1705_v6 = vld [vmem:[#allocation3 + $0x18] sm:$0x3]  ;;  %v1864_v3 = vsel %vm5006_vm9, %v5375_v22, %v5343_v7  ;;  %v1682_v8 = vmax.f32 %v1666_v54, 0.0  ;;  %v1683_v21 = vmax.f32 %v1667_v11, 0.0  ;;  %v5425_v20 = vpack.c.bf16 %v5415_v5, %v5415_v5  ;;  %v1707_v16 = vld [vmem:[#allocation3 + $0x28] sm:$0x3] }
 0x225   : > { %v5427_v53 = vpack.c.bf16 %v1705_v6, %v1705_v6  ;;  %v5429_v61 = vld [vmem:[#allocation3 + $0x30] sm:$0xff]  ;;  %v1709_v60 = vld [vmem:[#allocation3 + $0x38] sm:$0x3]  ;;  %v5433_v25 = vpack.c.bf16 %v5421_v28, %v5421_v28  ;;  %1694 = vst.msk [vmem:[#allocation3 + $0xb1] sm:$0xff] %vm1485_vm13, %v1678_v63  ;;  %1695 = vst.msk [vmem:[#allocation3 + $0xc1] sm:$0xff] %vm1485_vm13, %v1679_v1  ;;  %v1684_v37 = vmax.f32 %v1668_v30, 0.0  ;;  %v5439_v38 = vpack.c.bf16 %v1707_v16, %v1707_v16 }
 0x226   : > { %1696 = vst.msk [vmem:[#allocation3 + $0xd1] sm:$0xff] %vm1485_vm13, %v1680_v29  ;;  %1697 = vst.msk [vmem:[#allocation3 + $0xe1] sm:$0xff] %vm1485_vm13, %v1681_v0  ;;  %v5443_v40 = vpack.c.bf16 %v5429_v61, %v5429_v61  ;;  %v5445_v39 = vpack.c.bf16 %v1709_v60, %v1709_v60  ;;  %v1976_v35 = vsel %vm5006_vm9, %v5394_v10, %v5396_v17  ;;  %v1866_v13 = vshrl.u32 %v5425_v20, 16  ;;  %v1711_v41 = vld [vmem:[#allocation3 + $0x48] sm:$0x3]  ;;  %v5462_v15 = vld [vmem:[#allocation3 + $0x40] sm:$0xff] }
 0x227   : > { %1698 = vst.msk [vmem:[#allocation3 + $0xf1] sm:$0xff] %vm1485_vm13, %v1682_v8  ;;  %1699 = vst.msk [vmem:[#allocation3 + $0x101] sm:$0xff] %vm1485_vm13, %v1683_v21  ;;  %v1869_v31 = vshll.u32 %v5425_v20, 16  ;;  %v1875_v36 = vshll.u32 %v5427_v53, 16  ;;  %v1880_v42 = vshrl.u32 %v5433_v25, 16  ;;  %v1883_v43 = vshll.u32 %v5433_v25, 16 }
 0x228   : > { %1700 = vst.msk [vmem:[#allocation3 + $0x111] sm:$0xff] %vm1485_vm13, %v1684_v37  ;;  %v1889_v44 = vshll.u32 %v5439_v38, 16  ;;  %v1894_v45 = vshrl.u32 %v5443_v40, 16  ;;  %v1897_v47 = vshll.u32 %v5443_v40, 16  ;;  %v5464_v27 = vld [vmem:[#allocation3 + $0x50] sm:$0xff]  ;;  %v1868_v51 = vrot.slane %v1866_v13, 4 }
 0x229   : > { %v1871_v46 = vrot.slane %v1869_v31, 5  ;;  %v1877_v55 = vrot.slane %v1875_v36, 5  ;;  %v1882_v18 = vrot.slane %v1880_v42, 4  ;;  %v1713_v59 = vld [vmem:[#allocation3 + $0x58] sm:$0x3]  ;;  %v1885_v57 = vrot.slane %v1883_v43, 5 }
 0x22a   : > { %v1891_v12 = vrot.slane %v1889_v44, 5  ;;  %v1896_v50 = vrot.slane %v1894_v45, 4  ;;  %v1899_v19 = vrot.slane %v1897_v47, 5  ;;  %v1903_v62 = vshll.u32 %v5445_v39, 16  ;;  %v5486_v31 = vld [vmem:[#allocation3 + $0x60] sm:$0xff]  ;;  %v5497_v45 = vld [vmem:[#allocation3 + $0x70] sm:$0xff] }
 0x22b   : > { %v1872_v56 = vor.u32 %v1871_v46, %v1868_v51  ;;  %v5469_v33 = vpack.c.bf16 %v5462_v15, %v5462_v15  ;;  %v5471_v9 = vpack.c.bf16 %v1711_v41, %v1711_v41  ;;  %v1886_v26 = vor.u32 %v1885_v57, %v1882_v18  ;;  %v1715_v36 = vld [vmem:[#allocation3 + $0x68] sm:$0x3]  ;;  %v1717_v47 = vld [vmem:[#allocation3 + $0x78] sm:$0x3]  ;;  %v5499_v51 = vld [vmem:[#allocation3 + $0x80] sm:$0xff] }
 0x22c   : > { %v1900_v23 = vor.u32 %v1899_v19, %v1896_v50  ;;  %v5475_v54 = vpack.c.bf16 %v5464_v27, %v5464_v27  ;;  %v5477_v11 = vpack.c.bf16 %v1713_v59, %v1713_v59  ;;  %v1905_v63 = vrot.slane %v1903_v62, 5 }
 0x22d   : > { %v1873_v30 = vrot.slane %v1872_v56, 4  ;;  %v1908_v1 = vshrl.u32 %v5469_v33, 16  ;;  %v1911_v29 = vshll.u32 %v5469_v33, 16  ;;  %v1887_v0 = vrot.slane %v1886_v26, 4 }
 0x22e   : > { %v1901_v6 = vrot.slane %v1900_v23, 4  ;;  %v1917_v8 = vshll.u32 %v5471_v9, 16  ;;  %v1922_v21 = vshrl.u32 %v5475_v54, 16  ;;  %v1925_v13 = vshll.u32 %v5475_v54, 16  ;;  %v5678_v58 = vld [vmem:[#allocation3 + $0x100] sm:$0xff] }
 0x22f   : > { %v1878_v16 = vsel %vm5006_vm9, %v1873_v30, %v1877_v55  ;;  %v1910_v60 = vrot.slane %v1908_v1, 4  ;;  %v1913_v37 = vrot.slane %v1911_v29, 5  ;;  %v1892_v41 = vsel %vm5006_vm9, %v1887_v0, %v1891_v12  ;;  %v5514_v12 = vld [vmem:[%s6270_s4 + $0x8] sm:$0xf] }
 0x230   : > { %v3879_v42 = vcombine.low %v1864_v3, %v1878_v16  ;;  %v1906_v43 = vsel %vm5006_vm9, %v1901_v6, %v1905_v63  ;;  %v1919_v44 = vrot.slane %v1917_v8, 5  ;;  %v3963_v55 = vcombine.low %v1878_v16, %v1892_v41  ;;  %v1719_v8 = vld [vmem:[#allocation3 + $0x88] sm:$0x3] }
 0x231   : > { %v5501_v46 = vcombine.low %v1892_v41, %v1906_v43  ;;  %v1914_v18 = vor.u32 %v1913_v37, %v1910_v60  ;;  %v1924_v59 = vrot.slane %v1922_v21, 4  ;;  %v1927_v7 = vrot.slane %v1925_v13, 5  ;;  %v5542_v37 = vld [vmem:[%s6270_s4 + $0x18] sm:$0xf] }
 0x232   : > { %4343 = vmatprep.mubr.msk.bf16.mxu1 %vm1485_vm13, %v3879_v42  ;;  %v1931_v22 = vshll.u32 %v5477_v11, 16  ;;  %v5507_v3 = vpack.c.bf16 %v5486_v31, %v5486_v31  ;;  %v5509_v57 = vpack.c.bf16 %v1715_v36, %v1715_v36  ;;  %4415 = vmatprep.mubr.msk.bf16.mxu0 %vm1485_vm13, %v3963_v55  ;;  %v5521_v19 = vpack.c.bf16 %v5497_v45, %v5497_v45 }
 0x233   : > { %6293 = vst [vmem:[#allocation8_spill] sm:$0xff] %v5501_v46  ;;  %4344 = vmatmul.mubr.msk.bf16.vlgmr.msra.gmra.mrb[0].mxu1 %vm1485_vm13, %v5501_v46  ;;  %v1915_v50 = vrot.slane %v1914_v18, 4  ;;  %v5523_v56 = vpack.c.bf16 %v1717_v47, %v1717_v47  ;;  %v5527_v62 = vpack.c.bf16 %v5499_v51, %v5499_v51  ;;  %v1928_v26 = vor.u32 %v1927_v7, %v1924_v59  ;;  %v1725_v59 = vld [vmem:[#allocation3 + $0xb8] sm:$0x3] }
 0x234   : > { %4360 = vmatpush3.bf16.msra.mxu1 %v5338_v34  ;;  %v1933_v23 = vrot.slane %v1931_v22, 5  ;;  %v1936_v30 = vshrl.u32 %v5507_v3, 16  ;;  %v1939_v63 = vshll.u32 %v5507_v3, 16  ;;  %v1945_v29 = vshll.u32 %v5509_v57, 16 }
 0x235   : > { %v1920_v1 = vsel %vm5006_vm9, %v1915_v50, %v1919_v44  ;;  %v1950_v0 = vshrl.u32 %v5521_v19, 16  ;;  %v1953_v6 = vshll.u32 %v5521_v19, 16  ;;  %4711 = vmatprep.subr.msk.bf16.mxu1 %vm2123_vm15, %v5514_v12  ;;  %v1929_v21 = vrot.slane %v1928_v26, 4  ;;  %v5545_v44 = vld [vmem:[#allocation3 + $0xb0] sm:$0xff] }
 0x236   : > { %v3964_v34 = vcombine.low %v1906_v43, %v1920_v1  ;;  %v1938_v16 = vrot.slane %v1936_v30, 4  ;;  %v1941_v60 = vrot.slane %v1939_v63, 5  ;;  %v1947_v13 = vrot.slane %v1945_v29, 5 }
 0x237   : > { %v1952_v36 = vrot.slane %v1950_v0, 4  ;;  %v1955_v42 = vrot.slane %v1953_v6, 5  ;;  %v1959_v41 = vshll.u32 %v5523_v56, 16  ;;  %v1934_v43 = vsel %vm5006_vm9, %v1929_v21, %v1933_v23 }
 0x238   : > { %4416 = vmatmul.mubr.msk.bf16.vlgmr.msra.gmra.mrb[0].mxu0 %vm1485_vm13, %v3964_v34  ;;  %v1942_v47 = vor.u32 %v1941_v60, %v1938_v16  ;;  %v5550_v55 = vpack.c.bf16 %v1719_v8, %v1719_v8  ;;  %v2743_v18 = vshrl.u32 %v5527_v62, 16  ;;  %v5554_v7 = vcombine.low %v1920_v1, %v1934_v43 }
 0x239   : > { %4432 = vmatpush3.bf16.msra.mxu0 %v5341_v24  ;;  %v1956_v22 = vor.u32 %v1955_v42, %v1952_v36  ;;  %v1961_v50 = vrot.slane %v1959_v41, 5  ;;  %v2746_v26 = vshll.u32 %v5527_v62, 16  ;;  %v5560_v23 = vpack.c.bf16 %v5545_v44, %v5545_v44 }
 0x23a   : > { %6294 = vst [vmem:[#allocation9_spill] sm:$0xff] %v5554_v7  ;;  %v1943_v30 = vrot.slane %v1942_v47, 4  ;;  %v2745_v63 = vrot.slane %v2743_v18, 4  ;;  %v2752_v29 = vshll.u32 %v5550_v55, 16  ;;  %4716 = vmatprep.subr.msk.bf16.mxu0 %vm2123_vm15, %v5542_v37  ;;  %4347 = vmatprep.mubr.msk.bf16.mxu1 %vm1485_vm13, %v5554_v7  ;;  %v5566_v0 = vpack.c.bf16 %v1725_v59, %v1725_v59 }
 0x23b   : > { %v1957_v24 = vrot.slane %v1956_v22, 4  ;;  %v2748_v1 = vrot.slane %v2746_v26, 5  ;;  %v3912_v6 = vrot.slane %v5425_v20, 9  ;;  %v1978_v21 = vshrl.u32 %v5560_v23, 16 }
 0x23c   : > { %v1948_v8 = vsel %vm5006_vm9, %v1943_v30, %v1947_v13  ;;  %v2754_v34 = vrot.slane %v2752_v29, 5  ;;  %v1981_v16 = vshll.u32 %v5560_v23, 16  ;;  %v1987_v41 = vshll.u32 %v5566_v0, 16  ;;  %v5590_v29 = vld [vmem:[#allocation3 + $0xc0] sm:$0xff] }
 0x23d   : > { %v3965_v60 = vcombine.low %v1934_v43, %v1948_v8  ;;  %v1962_v36 = vsel %vm5006_vm9, %v1957_v24, %v1961_v50  ;;  %v2749_v42 = vor.u32 %v2748_v1, %v2745_v63  ;;  %v1980_v18 = vrot.slane %v1978_v21, 4  ;;  %v1727_v24 = vld [vmem:[#allocation3 + $0xc8] sm:$0x3] }
 0x23e   : > { %v5576_v47 = vcombine.low %v1948_v8, %v1962_v36  ;;  %v1983_v59 = vrot.slane %v1981_v16, 5  ;;  %v2362_v20 = vrot.slane %v5427_v53, 5  ;;  %v1989_v22 = vrot.slane %v1987_v41, 5  ;;  %v5602_v8 = vld [vmem:[#allocation3 + $0xd0] sm:$0xff] }
 0x23f   : > { %4419 = vmatprep.mubr.msk.bf16.mxu0 %vm1485_vm13, %v3965_v60  ;;  %v2750_v13 = vrot.slane %v2749_v42, 4  ;;  %v3913_v26 = vrot.slane %v5433_v25, 9  ;;  %v2366_v43 = vrot.slane %v5439_v38, 5  ;;  %v3914_v63 = vrot.slane %v5443_v40, 9  ;;  %v1729_v40 = vld [vmem:[#allocation3 + $0xd8] sm:$0x3] }
 0x240   : > { %6295 = vst [vmem:[#allocation10_spill] sm:$0xff] %v5576_v47  ;;  %4348 = vmatmul.mubr.msk.bf16.gmra.mrb[4].mxu1 %vm1485_vm13, %v5576_v47  ;;  %v1984_v50 = vor.u32 %v1983_v59, %v1980_v18  ;;  %v5586_v30 = vsel %vm5048_vm12, %v3912_v6, %v2362_v20  ;;  %v2370_v53 = vrot.slane %v5445_v39, 5  ;;  %v3915_v1 = vrot.slane %v5469_v33, 9  ;;  %v5623_v42 = vld [vmem:[#allocation3 + $0xe0] sm:$0xff] }
 0x241   : > { %v5594_v25 = vsel %vm5006_vm9, %v2750_v13, %v2754_v34  ;;  %v5598_v38 = vsel %vm5048_vm12, %v3913_v26, %v2366_v43  ;;  %v2374_v6 = vrot.slane %v5471_v9, 5  ;;  %v5617_v33 = vpack.c.bf16 %v5590_v29, %v5590_v29  ;;  %v1731_v13 = vld [vmem:[#allocation3 + $0xe8] sm:$0x3] }
 0x242   : > { %6296 = vst [vmem:[#allocation11_spill] sm:$0xff] %v5594_v25  ;;  %6297 = vst [vmem:[#allocation12_spill] sm:$0xff] %v5598_v38  ;;  %v3966_v39 = vcombine.low %v1962_v36, %v5594_v25  ;;  %v1985_v21 = vrot.slane %v1984_v50, 4  ;;  %v5607_v16 = vsel %vm5048_vm12, %v3914_v63, %v2370_v53  ;;  %v3981_v34 = vcombine.low %v5586_v30, %v5598_v38  ;;  %v5648_v50 = vld [vmem:[#allocation3 + $0xf0] sm:$0xff]  ;;  %v1735_v38 = vld [vmem:[#allocation3 + $0x108] sm:$0x3] }
 0x243   : > { %6298 = vst [vmem:[#allocation13_spill] sm:$0xff] %v5607_v16  ;;  %v5613_v60 = vsel %vm5048_vm12, %v3915_v1, %v2374_v6  ;;  %v5619_v9 = vpack.c.bf16 %v1727_v24, %v1727_v24  ;;  %v3091_v36 = vsel %vm2123_vm15, %v5542_v37, 0  ;;  %v5634_v59 = vpack.c.bf16 %v5602_v8, %v5602_v8  ;;  %v1733_v1 = vld [vmem:[#allocation3 + $0xf8] sm:$0x3] }
 0x244   : > { %6299 = vst [vmem:[#allocation14_spill] sm:$0xff] %v5613_v60  ;;  %4420 = vmatmul.mubr.msk.bf16.gmra.mrb[4].mxu0 %vm1485_vm13, %v3966_v39  ;;  %v5628_v41 = vsel %vm5006_vm9, %v1985_v21, %v1989_v22  ;;  %v3982_v18 = vcombine.low %v5607_v16, %v5613_v60  ;;  %v5636_v20 = vpack.c.bf16 %v1729_v40, %v1729_v40  ;;  %v1992_v22 = vshrl.u32 %v5617_v33, 16  ;;  %v5685_v16 = vld [vmem:[#allocation3 + $0x110] sm:$0xff] }
 0x245   : > { %v3883_v37 = vcombine.low %v1976_v35, %v5628_v41  ;;  %4433 = vmatprep.mubr.msk.bf16.mxu0 %vm1485_vm13, %v3981_v34  ;;  %v1995_v26 = vshll.u32 %v5617_v33, 16  ;;  %v2001_v43 = vshll.u32 %v5619_v9, 16  ;;  %v2006_v63 = vshrl.u32 %v5634_v59, 16 }
 0x246   : > { %v2009_v53 = vshll.u32 %v5634_v59, 16  ;;  %v2015_v24 = vshll.u32 %v5636_v20, 16  ;;  %v5655_v10 = vpack.c.bf16 %v5623_v42, %v5623_v42  ;;  %v1994_v17 = vrot.slane %v1992_v22, 4 }
 0x247   : > { %4351 = vmatprep.mubr.msk.bf16.mxu1 %vm1485_vm13, %v3883_v37  ;;  %v1997_v35 = vrot.slane %v1995_v26, 5  ;;  %v2003_v6 = vrot.slane %v2001_v43, 5  ;;  %v5658_v40 = vpack.c.bf16 %v1731_v13, %v1731_v13  ;;  %v2008_v39 = vrot.slane %v2006_v63, 4 }
 0x248   : > { %v2011_v21 = vrot.slane %v2009_v53, 5  ;;  %v2017_v34 = vrot.slane %v2015_v24, 5  ;;  %v5662_v48 = vpack.c.bf16 %v5648_v50, %v5648_v50  ;;  %v5664_v47 = vpack.c.bf16 %v1733_v1, %v1733_v1  ;;  %v5675_v1 = vld [vmem:[%s6270_s4 + $0x1c] sm:$0xf] }
 0x249   : > { %v1998_v25 = vor.u32 %v1997_v35, %v1994_v17  ;;  %v2020_v7 = vshrl.u32 %v5655_v10, 16  ;;  %v2023_v46 = vshll.u32 %v5655_v10, 16  ;;  %v2029_v22 = vshll.u32 %v5658_v40, 16 }
 0x24a   : > { %v2012_v37 = vor.u32 %v2011_v21, %v2008_v39  ;;  %v2034_v13 = vshrl.u32 %v5662_v48, 16  ;;  %v2037_v26 = vshll.u32 %v5662_v48, 16  ;;  %v2043_v24 = vshll.u32 %v5664_v47, 16 }
 0x24b   : > { %v1999_v43 = vrot.slane %v1998_v25, 4  ;;  %v2022_v63 = vrot.slane %v2020_v7, 4  ;;  %v2025_v53 = vrot.slane %v2023_v46, 5  ;;  %v2031_v35 = vrot.slane %v2029_v22, 5 }
 0x24c   : > { %v2013_v17 = vrot.slane %v2012_v37, 4  ;;  %4434 = vmatmul.mubr.msk.bf16.vlgmr.msra.gmra.mrb[0].mxu0 %vm1485_vm13, %v3982_v18  ;;  %v2036_v39 = vrot.slane %v2034_v13, 4  ;;  %v2039_v21 = vrot.slane %v2037_v26, 5  ;;  %v2045_v7 = vrot.slane %v2043_v24, 5  ;;  %v1737_v26 = vld [vmem:[#allocation3 + $0x118] sm:$0x3] }
 0x24d   : > { %v5682_v25 = vsel %vm5006_vm9, %v1999_v43, %v2003_v6  ;;  %4450 = vmatpush3.bf16.msra.mxu0 %v3091_v36  ;;  %v2026_v46 = vor.u32 %v2025_v53, %v2022_v63  ;;  %v3916_v60 = vrot.slane %v5475_v54, 9  ;;  %v2378_v22 = vrot.slane %v5477_v11, 5 }
 0x24e   : > { %v5689_v18 = vsel %vm5006_vm9, %v2013_v17, %v2017_v34  ;;  %v2040_v37 = vor.u32 %v2039_v21, %v2036_v39  ;;  %v3917_v13 = vrot.slane %v5507_v3, 9  ;;  %4717 = vmatprep.subr.msk.bf16.mxu0 %vm2123_vm15, %v5675_v1  ;;  %v2382_v6 = vrot.slane %v5509_v57, 5 }
 0x24f   : > { %6300 = vst [vmem:[#allocation15_spill] sm:$0xff] %v5689_v18  ;;  %v5697_v36 = vcombine.low %v5682_v25, %v5689_v18  ;;  %v2027_v54 = vrot.slane %v2026_v46, 4  ;;  %v5702_v34 = vpack.c.bf16 %v5678_v58, %v5678_v58  ;;  %v5706_v11 = vsel %vm5048_vm12, %v3916_v60, %v2378_v22 }
 0x250   : > { %v2041_v43 = vrot.slane %v2040_v37, 4  ;;  %v5708_v3 = vpack.c.bf16 %v1735_v38, %v1735_v38  ;;  %v5712_v63 = vpack.c.bf16 %v5685_v16, %v5685_v16  ;;  %v5722_v53 = vsel %vm5048_vm12, %v3917_v13, %v2382_v6 }
 0x251   : > { %6301 = vst [vmem:[#allocation16_spill] sm:$0xff] %v5697_v36  ;;  %4352 = vmatmul.mubr.msk.bf16.gmra.mrb[8].mxu1 %vm1485_vm13, %v5697_v36  ;;  %v5718_v57 = vsel %vm5006_vm9, %v2027_v54, %v2031_v35  ;;  %6303 = vst [vmem:[#allocation18_spill] sm:$0xff] %v5722_v53  ;;  %v5724_v24 = vpack.c.bf16 %v1737_v26, %v1737_v26  ;;  %v2048_v38 = vshrl.u32 %v5702_v34, 16  ;;  %v2051_v35 = vshll.u32 %v5702_v34, 16 }
 0x252   : > { %6302 = vst [vmem:[#allocation17_spill] sm:$0xff] %v5718_v57  ;;  %v5729_v60 = vsel %vm5006_vm9, %v2041_v43, %v2045_v7  ;;  %v3983_v39 = vcombine.low %v5706_v11, %v5722_v53  ;;  %v2057_v37 = vshll.u32 %v5708_v3, 16  ;;  %v2062_v22 = vshrl.u32 %v5712_v63, 16 }
 0x253   : > { %v5738_v21 = vcombine.low %v5718_v57, %v5729_v60  ;;  %v2050_v46 = vrot.slane %v2048_v38, 4  ;;  %v2053_v7 = vrot.slane %v2051_v35, 5  ;;  %v2065_v13 = vshll.u32 %v5712_v63, 16 }
 0x254   : > { %4437 = vmatprep.mubr.msk.bf16.mxu0 %vm1485_vm13, %v3983_v39  ;;  %v2071_v26 = vshll.u32 %v5724_v24, 16  ;;  %v3918_v54 = vrot.slane %v5521_v19, 9  ;;  %v2059_v6 = vrot.slane %v2057_v37, 5  ;;  %v2064_v43 = vrot.slane %v2062_v22, 4 }
 0x255   : > { %6304 = vst [vmem:[#allocation19_spill] sm:$0xff] %v5738_v21  ;;  %4355 = vmatprep.mubr.msk.bf16.mxu1 %vm1485_vm13, %v5738_v21  ;;  %v2386_v38 = vrot.slane %v5523_v56, 5  ;;  %v3979_v17 = vrot.slane %v5527_v62, 9  ;;  %v2054_v57 = vor.u32 %v2053_v7, %v2050_v46  ;;  %v2067_v18 = vrot.slane %v2065_v13, 5 }
 0x256   : > { %v2073_v36 = vrot.slane %v2071_v26, 5  ;;  %v2922_v39 = vrot.slane %v5550_v55, 5  ;;  %v3920_v19 = vrot.slane %v5560_v23, 9  ;;  %v2394_v53 = vrot.slane %v5566_v0, 5 }
 0x257   : > { %v5753_v35 = vsel %vm5048_vm12, %v3918_v54, %v2386_v38  ;;  %v3921_v37 = vrot.slane %v5617_v33, 9  ;;  %v2055_v22 = vrot.slane %v2054_v57, 4  ;;  %v2068_v21 = vor.u32 %v2067_v18, %v2064_v43 }
 0x258   : > { %v5760_v56 = vsel %vm5048_vm12, %v3979_v17, %v2922_v39  ;;  %v2398_v62 = vrot.slane %v5619_v9, 5  ;;  %v5767_v46 = vsel %vm5048_vm12, %v3920_v19, %v2394_v53  ;;  %v3922_v23 = vrot.slane %v5634_v59, 9 }
 0x259   : > { %v3984_v55 = vcombine.low %v5753_v35, %v5760_v56  ;;  %v5772_v0 = vsel %vm5006_vm9, %v2055_v22, %v2059_v6  ;;  %v2069_v33 = vrot.slane %v2068_v21, 4  ;;  %v2402_v9 = vrot.slane %v5636_v20, 5 }
 0x25a   : > { %v5776_v18 = vsel %vm5048_vm12, %v3921_v37, %v2398_v62  ;;  %v4099_v57 = vpack.c.bf16 %v5415_v5, %v5316_v32  ;;  %v3923_v59 = vrot.slane %v5655_v10, 9  ;;  %v2406_v17 = vrot.slane %v5658_v40, 5  ;;  %v1765_v62 = vld [vmem:[%s6270_s4 + $0xc] sm:$0xf] }
 0x25b   : > { %4438 = vmatmul.mubr.msk.bf16.gmra.mrb[4].mxu0 %vm1485_vm13, %v3984_v55  ;;  %v3985_v53 = vcombine.low %v5767_v46, %v5776_v18  ;;  %v5788_v21 = vsel %vm5006_vm9, %v2069_v33, %v2073_v36  ;;  %v5792_v7 = vsel %vm5048_vm12, %v3922_v23, %v2402_v9  ;;  %v3924_v20 = vrot.slane %v5662_v48, 9 }
 0x25c   : > { %v2410_v13 = vrot.slane %v5664_v47, 5  ;;  %v5798_v32 = vcombine.low %v5772_v0, %v5788_v21  ;;  %v5803_v10 = vsel %vm5048_vm12, %v3923_v59, %v2406_v17  ;;  %v3925_v40 = vrot.slane %v5702_v34, 9 }
 0x25d   : > { %4441 = vmatprep.mubr.msk.bf16.mxu0 %vm1485_vm13, %v3985_v53  ;;  %v2414_v36 = vrot.slane %v5708_v3, 5  ;;  %v1685_v48 = vmax.f32 %v5413_v49, 0.0  ;;  %v3986_v47 = vcombine.low %v5792_v7, %v5803_v10  ;;  %v4100_v49 = vpack.c.bf16 %v5429_v61, %v5421_v28 }
 0x25e   : > { %v5809_v26 = vsel %vm5048_vm12, %v3924_v20, %v2410_v13  ;;  %4356 = vmatmul.mubr.msk.bf16.gmra.mrb[12].mxu1 %vm1485_vm13, %v5798_v32  ;;  %v4101_v3 = vpack.c.bf16 %v5464_v27, %v5462_v15  ;;  %v4107_v6 = vpack.c.bf16 %v5421_v28, %v5415_v5  ;;  %v4108_v43 = vpack.c.bf16 %v5462_v15, %v5429_v61  ;;  %v6315_v5 = vld [vmem:[#allocation19_spill] sm:$0xff]  ;;  %v6316_v28 = vld [vmem:[#allocation6_spill] sm:$0xff] }
 0x25f   : > { %v5818_v54 = vsel %vm5048_vm12, %v3925_v40, %v2414_v36  ;;  %4361 = vmatprep.mubr.msk.bf16.mxu1 %vm1485_vm13, %v4099_v57  ;;  %1701 = vst.msk [vmem:[#allocation3 + $0x121] sm:$0xff] %vm1485_vm13, %v1685_v48  ;;  %v4109_v38 = vpack.c.bf16 %v5486_v31, %v5464_v27  ;;  %v2469_v39 = vsel %vm2123_vm15, %v5514_v12, 0  ;;  %v4110_v19 = vpack.c.bf16 %v5499_v51, %v5497_v45 }
 0x260   : > { %v3987_v34 = vcombine.low %v5809_v26, %v5818_v54  ;;  %v3926_v37 = vrot.slane %v5712_v63, 9  ;;  %v2418_v22 = vrot.slane %v5724_v24, 5  ;;  %v4111_v55 = vpack.c.bf16 %v5590_v29, %v5545_v44 }
 0x261   : > { %v4112_v23 = vpack.c.bf16 %v5623_v42, %v5602_v8  ;;  %v4113_v63 = vpack.c.bf16 %v5678_v58, %v5648_v50  ;;  %v4102_v20 = vpack.c.bf16 %v5497_v45, %v5486_v31  ;;  %v4103_v40 = vpack.c.bf16 %v5545_v44, %v5331_v14  ;;  %v6318_v44 = vld [vmem:[#allocation17_spill] sm:$0xff] }
 0x262   : > { %v5866_v53 = vsel %vm5048_vm12, %v3926_v37, %v2418_v22  ;;  %v3967_v36 = vcombine.low %v5628_v41, %v5682_v25  ;;  %v3969_v48 = vcombine.low %v5729_v60, %v5772_v0  ;;  %v4104_v14 = vpack.c.bf16 %v5602_v8, %v5590_v29  ;;  %v1770_v37 = vld [vmem:[%s6270_s4 + $0x20] sm:$0xf] }
 0x263   : > { %4442 = vmatmul.mubr.msk.bf16.gmra.mrb[8].mxu0 %vm1485_vm13, %v3986_v47  ;;  %v4106_v22 = vpack.c.bf16 %v5685_v16, %v5678_v58 }
 0x264   : > { %4445 = vmatprep.mubr.msk.bf16.mxu0 %vm1485_vm13, %v3987_v34  ;;  %v4105_v34 = vpack.c.bf16 %v5648_v50, %v5623_v42 }
 0x266   : > { %4362 = vmatmul.mubr.msk.bf16.vlgmr.msra.gmra.mrb[0].mxu1 %vm1485_vm13, %v4100_v49  ;;  %v5850_v12 = vld [vmem:[#allocation3 + $0x120] sm:$0xff]  ;;  %v1739_v33 = vld [vmem:[#allocation3 + $0x128] sm:$0x3] }
 0x267   : > { %4378 = vmatpush3.bf16.msra.mxu1 %v2469_v39  ;;  %4365 = vmatprep.mubr.msk.bf16.mxu1 %vm1485_vm13, %v4101_v3  ;;  %v5857_v24 = vpack.c.bf16 %v5850_v12, %v5850_v12  ;;  %v5859_v9 = vpack.c.bf16 %v1739_v33, %v1739_v33  ;;  %v4114_v57 = vpack.c.bf16 %v5850_v12, %v5685_v16  ;;  %v3251_v39 = vsel %vm2123_vm15, %v5675_v1, 0 }
 0x268   : > { %4712 = vmatprep.subr.msk.bf16.mxu1 %vm2123_vm15, %v1765_v62  ;;  %v3927_v33 = vcombine.low %v5373_v52, %v5586_v30  ;;  %v2621_v52 = vsel %vm2123_vm15, %v1765_v62, 0  ;;  %v1740_v30 = vld [vmem:[#allocation3 + $0x130] sm:$0xff] }
 0x269   : > { %v3980_v59 = vrot.slane %v5857_v24, 9  ;;  %v2926_v17 = vrot.slane %v5859_v9, 5  ;;  %v4733_v62 = vld [vmem:[%s6270_s4 + $0x10] sm:$0xf] }
 0x26b   : > { %v5874_v13 = vsel %vm5048_vm12, %v3980_v59, %v2926_v17  ;;  %v6306_v59 = vld [vmem:[#allocation12_spill] sm:$0xff] }
 0x26c   : > { %v3988_v47 = vcombine.low %v5866_v53, %v5874_v13 }
 0x26e   : > { %4366 = vmatmul.mubr.msk.bf16.gmra.mrb[4].mxu1 %vm1485_vm13, %v4102_v20  ;;  %4446 = vmatmul.mubr.msk.bf16.gmra.mrb[12].mxu0 %vm1485_vm13, %v3988_v47 }
 0x26f   : > { %4369 = vmatprep.mubr.msk.bf16.mxu1 %vm1485_vm13, %v4103_v40  ;;  %4451 = vmatprep.mubr.msk.bf16.mxu0 %vm1485_vm13, %v4100_v49  ;;  %v1720_v49 = vld [vmem:[#allocation3 + $0x90] sm:$0xff]  ;;  %v6307_v40 = vld [vmem:[#allocation14_spill] sm:$0xff] }
 0x270   : > { %v4119_v1 = vpack.c.bf16 %v1720_v49, %v5499_v51  ;;  %v5919_v47 = vcombine.low %v6307_v40, %v5706_v11  ;;  %v1721_v11 = vld [vmem:[#allocation3 + $0x98] sm:$0x3]  ;;  %v6317_v51 = vld [vmem:[#allocation15_spill] sm:$0xff] }
 0x271   : > { %v6319_v29 = vcombine.low %v6317_v51, %v6318_v44 }
 0x276   : > { %4370 = vmatmul.mubr.msk.bf16.gmra.mrb[8].mxu1 %vm1485_vm13, %v4104_v14  ;;  %4452 = vmatmul.mubr.msk.bf16.vlgmr.msra.gmra.mrb[0].mxu0 %vm1485_vm13, %v4101_v3  ;;  %v6305_v3 = vld [vmem:[#allocation13_spill] sm:$0xff] }
 0x277   : > { %4468 = vmatpush3.bf16.msra.mxu0 %v3251_v39  ;;  %4373 = vmatprep.mubr.msk.bf16.mxu1 %vm1485_vm13, %v4105_v34  ;;  %v5913_v17 = vcombine.low %v6306_v59, %v6305_v3  ;;  %v5941_v59 = vpack.c.bf16 %v1721_v11, %v1721_v11 }
 0x278   : > { %4455 = vmatprep.mubr.msk.bf16.mxu0 %vm1485_vm13, %v4102_v20  ;;  %4718 = vmatprep.subr.msk.bf16.mxu0 %vm2123_vm15, %v1770_v37  ;;  %v5915_v20 = vpack.c.bf16 %v1720_v49, %v1720_v49 }
 0x279   : > { %v3368_v15 = vrot.slane %v5941_v59, 5 }
 0x27a   : > { %v3216_v39 = vshll.u32 %v5915_v20, 16  ;;  %v4021_v4 = vrot.slane %v5915_v20, 9 }
 0x27c   : > { %v3369_v27 = vsel %vm5048_vm12, %v4021_v4, %v3368_v15 }
 0x27d   : > { %v4023_v31 = vcombine.low %v5760_v56, %v3369_v27 }
 0x27e   : > { %4374 = vmatmul.mubr.msk.bf16.gmra.mrb[12].mxu1 %vm1485_vm13, %v4106_v22  ;;  %4456 = vmatmul.mubr.msk.bf16.gmra.mrb[4].mxu0 %vm1485_vm13, %v4119_v1  ;;  %v4120_v1 = vpack.c.bf16 %v1740_v30, %v5850_v12 }
 0x27f   : > { %4379 = vmatprep.mubr.msk.bf16.mxu1 %vm1485_vm13, %v3927_v33  ;;  %4459 = vmatprep.mubr.msk.bf16.mxu0 %vm1485_vm13, %v4104_v14  ;;  %v3213_v14 = vshrl.u32 %v5915_v20, 16  ;;  %v6309_v33 = vld [vmem:[#allocation7_spill] sm:$0xff] }
 0x280   : > { %v3931_v3 = vcombine.low %v6309_v33, %v5767_v46  ;;  %v3932_v46 = vcombine.low %v5776_v18, %v5792_v7  ;;  %v6311_v33 = vld [vmem:[#allocation9_spill] sm:$0xff]  ;;  %v1741_v7 = vld [vmem:[#allocation3 + $0x138] sm:$0x3] }
 0x281   : > { %v3215_v40 = vrot.slane %v3213_v14, 4  ;;  %v3933_v14 = vcombine.low %v5803_v10, %v5809_v26  ;;  %v2757_v10 = vshrl.u32 %v5857_v24, 16  ;;  %v2760_v26 = vshll.u32 %v5857_v24, 16  ;;  %v6314_v24 = vld [vmem:[#allocation16_spill] sm:$0xff] }
 0x286   : > { %4380 = vmatmul.mubr.msk.bf16.vlgmr.msra.gmra.mrb[0].mxu1 %vm1485_vm13, %v5913_v17  ;;  %4460 = vmatmul.mubr.msk.bf16.gmra.mrb[8].mxu0 %vm1485_vm13, %v4105_v34  ;;  %v6308_v34 = vld [vmem:[#allocation18_spill] sm:$0xff] }
 0x287   : > { %4396 = vmatpush3.bf16.msra.mxu1 %v2621_v52  ;;  %4383 = vmatprep.mubr.msk.bf16.mxu1 %vm1485_vm13, %v5919_v47  ;;  %v5936_v49 = vcombine.low %v6308_v34, %v5753_v35  ;;  %v6310_v52 = vld [vmem:[#allocation8_spill] sm:$0xff]  ;;  %v5950_v34 = vpack.c.bf16 %v1740_v30, %v1740_v30  ;;  %v6312_v30 = vld [vmem:[#allocation10_spill] sm:$0xff] }
 0x288   : > { %4463 = vmatprep.mubr.msk.bf16.mxu0 %vm1485_vm13, %v4106_v22  ;;  %4714 = vmatprep.subr.msk.bf16.mxu1 %vm2123_vm15, %v4733_v62  ;;  %v3218_v22 = vrot.slane %v3216_v39, 5  ;;  %v3222_v62 = vshll.u32 %v5941_v59, 16 }
 0x289   : > { %v4022_v58 = vrot.slane %v5950_v34, 9 }
 0x28a   : > { %v3219_v35 = vor.u32 %v3218_v22, %v3215_v40  ;;  %v3224_v11 = vrot.slane %v3222_v62, 5  ;;  %v3934_v40 = vcombine.low %v5818_v54, %v5866_v53  ;;  %v6313_v22 = vld [vmem:[#allocation11_spill] sm:$0xff]  ;;  %v2759_v62 = vrot.slane %v2757_v10, 4 }
 0x28b   : > { %v2766_v53 = vshll.u32 %v5859_v9, 16 }
 0x28c   : > { %v3220_v39 = vrot.slane %v3219_v35, 4  ;;  %v4124_v35 = vpack.c.bf16 %v1741_v7, %v1741_v7 }
 0x28e   : > { %4384 = vmatmul.mubr.msk.bf16.gmra.mrb[4].mxu1 %vm1485_vm13, %v5936_v49  ;;  %4464 = vmatmul.mubr.msk.bf16.gmra.mrb[12].mxu0 %vm1485_vm13, %v4120_v1  ;;  %v3385_v1 = vsel %vm2123_vm15, %v1770_v37, 0  ;;  %v3225_v18 = vsel %vm5006_vm9, %v3220_v39, %v3224_v11  ;;  %v3230_v37 = vshll.u32 %v5950_v34, 16  ;;  %v3372_v45 = vrot.slane %v4124_v35, 5 }
 0x28f   : > { %4387 = vmatprep.mubr.msk.bf16.mxu1 %vm1485_vm13, %v3931_v3  ;;  %4469 = vmatprep.mubr.msk.bf16.mxu0 %vm1485_vm13, %v6310_v52  ;;  %v3227_v3 = vshrl.u32 %v5950_v34, 16  ;;  %v4011_v52 = vcombine.low %v6313_v22, %v3225_v18  ;;  %v3236_v18 = vshll.u32 %v4124_v35, 16 }
 0x290   : > { %v3232_v39 = vrot.slane %v3230_v37, 5  ;;  %v3373_v8 = vsel %vm5048_vm12, %v4022_v58, %v3372_v45 }
 0x291   : > { %v4024_v42 = vcombine.low %v5874_v13, %v3373_v8 }
 0x296   : > { %4388 = vmatmul.mubr.msk.bf16.gmra.mrb[8].mxu1 %vm1485_vm13, %v3932_v46  ;;  %4470 = vmatmul.mubr.msk.bf16.vlgmr.msra.gmra.mrb[0].mxu0 %vm1485_vm13, %v6311_v33  ;;  %v3229_v33 = vrot.slane %v3227_v3, 4  ;;  %v2768_v3 = vrot.slane %v2766_v53, 5 }
 0x297   : > { %4486 = vmatpush3.bf16.msra.mxu0 %v3385_v1  ;;  %4391 = vmatprep.mubr.msk.bf16.mxu1 %vm1485_vm13, %v3933_v14  ;;  %v2762_v1 = vrot.slane %v2760_v26, 5  ;;  %v3238_v26 = vrot.slane %v3236_v18, 5 }
 0x298   : > { %4473 = vmatprep.mubr.msk.bf16.mxu0 %vm1485_vm13, %v6312_v30  ;;  %v3233_v11 = vor.u32 %v3232_v39, %v3229_v33 }
 0x299   : > { %v2763_v54 = vor.u32 %v2762_v1, %v2759_v62 }
 0x29a   : > { %v3234_v10 = vrot.slane %v3233_v11, 4 }
 0x29b   : > { %v2764_v7 = vrot.slane %v2763_v54, 4 }
 0x29c   : > { %v3239_v9 = vsel %vm5006_vm9, %v3234_v10, %v3238_v26 }
 0x29e   : > { %4392 = vmatmul.mubr.msk.bf16.gmra.mrb[12].mxu1 %vm1485_vm13, %v3934_v40  ;;  %4474 = vmatmul.mubr.msk.bf16.gmra.mrb[4].mxu0 %vm1485_vm13, %v4011_v52 }
 0x29f   : > { %4397 = vmatprep.mubr.msk.bf16.mxu1 %vm1485_vm13, %v4107_v6  ;;  %4477 = vmatprep.mubr.msk.bf16.mxu0 %vm1485_vm13, %v6314_v24  ;;  %v2769_v6 = vsel %vm5006_vm9, %v2764_v7, %v2768_v3 }
 0x2a0   : > { %v4012_v61 = vcombine.low %v2769_v6, %v3239_v9  ;;  %v3970_v16 = vcombine.low %v5788_v21, %v2769_v6 }
 0x2a6   : > { %4398 = vmatmul.mubr.msk.bf16.vlgmr.msra.gmra.mrb[0].mxu1 %vm1485_vm13, %v4108_v43  ;;  %4478 = vmatmul.mubr.msk.bf16.gmra.mrb[8].mxu0 %vm1485_vm13, %v6315_v5 }
 0x2a7   : > { %4570 = vmatpush3.bf16.msra.mxu1 %v6316_v28  ;;  %4401 = vmatprep.mubr.msk.bf16.mxu1 %vm1485_vm13, %v4109_v38 }
 0x2a8   : > { %4481 = vmatprep.mubr.msk.bf16.mxu0 %vm1485_vm13, %v5798_v32 }
 0x2ae   : > { %4402 = vmatmul.mubr.msk.bf16.gmra.mrb[4].mxu1 %vm1485_vm13, %v4110_v19  ;;  %4482 = vmatmul.mubr.msk.bf16.gmra.mrb[12].mxu0 %vm1485_vm13, %v4012_v61 }
 0x2af   : > { %4405 = vmatprep.mubr.msk.bf16.mxu1 %vm1485_vm13, %v4111_v55  ;;  %4487 = vmatprep.mubr.msk.bf16.mxu0 %vm1485_vm13, %v5913_v17 }
 0x2b6   : > { %4406 = vmatmul.mubr.msk.bf16.gmra.mrb[8].mxu1 %vm1485_vm13, %v4112_v23  ;;  %4488 = vmatmul.mubr.msk.bf16.vlgmr.msra.gmra.mrb[0].mxu0 %vm1485_vm13, %v5919_v47 }
 0x2b7   : > { %4409 = vmatprep.mubr.msk.bf16.mxu1 %vm1485_vm13, %v4113_v63  ;;  %4491 = vmatprep.mubr.msk.bf16.mxu0 %vm1485_vm13, %v5936_v49 }
 0x2be   : > { %4410 = vmatmul.mubr.msk.bf16.gmra.mrb[12].mxu1 %vm1485_vm13, %v4114_v57  ;;  %4492 = vmatmul.mubr.msk.bf16.gmra.mrb[4].mxu0 %vm1485_vm13, %v4023_v31 }
 0x2bf   : > { %4423 = vmatprep.mubr.msk.bf16.mxu1 %vm1485_vm13, %v3967_v36  ;;  %4495 = vmatprep.mubr.msk.bf16.mxu0 %vm1485_vm13, %v3932_v46 }
 0x2c6   : > { %4424 = vmatmul.mubr.msk.bf16.vlgmr.msra.gmra.mrb[8].mxu1 %vm1485_vm13, %v6319_v29  ;;  %4496 = vmatmul.mubr.msk.bf16.gmra.mrb[8].mxu0 %vm1485_vm13, %v3933_v14 }
 0x2c7   : > { %4427 = vmatprep.mubr.msk.bf16.mxu1 %vm1485_vm13, %v3969_v48  ;;  %4499 = vmatprep.mubr.msk.bf16.mxu0 %vm1485_vm13, %v3934_v40 }
 0x2ce   : > { %4428 = vmatmul.mubr.msk.bf16.gmra.mrb[12].mxu1 %vm1485_vm13, %v3970_v16  ;;  %4500 = vmatmul.mubr.msk.bf16.gmra.mrb[12].mxu0 %vm1485_vm13, %v4024_v42 }
 0x379   : > { %v4399_v41 = vpop.f32.mrb[0].mxu1 }
 0x37a   : > { %v2657_v50 = vpop.f32.mrb[1].mxu1 }
 0x37b   : > { %v4400_v25 = vpop.f32.mrb[2].mxu1 }
 0x37c   : > { %v2660_v56 = vpop.f32.mrb[3].mxu1 }
 0x381   : > { %v4403_v60 = vpop.f32.mrb[4].mxu1 }
 0x382   : > { %v2673_v0 = vpop.f32.mrb[5].mxu1 }
 0x383   : > { %v4404_v32 = vpop.f32.mrb[6].mxu1 }
 0x384   : > { %v2676_v43 = vpop.f32.mrb[7].mxu1 }
 0x389   : > { %v4489_v38 = vpop.f32.mrb[0].mxu0 }
 0x38a   : > { %v6053_v19 = vadd.f32 %v4489_v38, %v4399_v41  ;;  %v3421_v2 = vpop.f32.mrb[1].mxu0 }
 0x38b   : > { %v6055_v55 = vadd.f32 %v3421_v2, %v2657_v50  ;;  %v4490_v21 = vpop.f32.mrb[2].mxu0 }
 0x38c   : > { %v6057_v23 = vadd.f32 %v4490_v21, %v4400_v25  ;;  %v3424_v12 = vpop.f32.mrb[3].mxu0  ;;  %v3503_v48 = vsel %vm1485_vm13, %v6053_v19, 0.0 }
 0x38d   : > { %v6059_v63 = vadd.f32 %v3424_v12, %v2660_v56  ;;  %v3500_v57 = vsel %vm1485_vm13, %v6055_v55, 0.0 }
 0x38e   : > { %v3505_v59 = vsel %vm1485_vm13, %v6057_v23, 0.0 }
 0x38f   : > { %v3501_v13 = vsel %vm1485_vm13, %v6059_v63, 0.0 }
 0x390   : > { %v3502_v36 = vadd.f32 %v3501_v13, %v3500_v57 }
 0x391   : > { %v4493_v17 = vpop.f32.mrb[4].mxu0 }
 0x392   : > { %v3504_v20 = vadd.f32 %v3503_v48, %v3502_v36  ;;  %v6067_v47 = vadd.f32 %v4493_v17, %v4403_v60  ;;  %v3437_v49 = vpop.f32.mrb[5].mxu0 }
 0x393   : > { %v6071_v34 = vadd.f32 %v3437_v49, %v2673_v0  ;;  %v4494_v46 = vpop.f32.mrb[6].mxu0 }
 0x394   : > { %v3506_v14 = vadd.f32 %v3505_v59, %v3504_v20  ;;  %v6073_v37 = vadd.f32 %v4494_v46, %v4404_v32  ;;  %v3440_v30 = vpop.f32.mrb[7].mxu0  ;;  %v3511_v1 = vsel %vm1485_vm13, %v6067_v47, 0.0 }
 0x395   : > { %v3507_v40 = vsel %vm1485_vm13, %v6071_v34, 0.0  ;;  %v4578_v22 = vadd.f32 %v3440_v30, %v2676_v43 }
 0x396   : > { %v3508_v52 = vadd.f32 %v3507_v40, %v3506_v14  ;;  %v3513_v18 = vsel %vm1485_vm13, %v6073_v37, 0.0 }
 0x397   : > { %v3509_v35 = vsel %vm1485_vm13, %v4578_v22, 0.0 }
 0x398   : > { %v3510_v62 = vadd.f32 %v3509_v35, %v3508_v52 }
 0x399   : > { %v4425_v33 = vpop.f32.mrb[8].mxu1  ;;  %v4497_v39 = vpop.f32.mrb[8].mxu0 }
 0x39a   : > { %v3512_v24 = vadd.f32 %v3511_v1, %v3510_v62  ;;  %v4579_v54 = vadd.f32 %v4497_v39, %v4425_v33  ;;  %v2873_v53 = vpop.f32.mrb[9].mxu1  ;;  %v3453_v11 = vpop.f32.mrb[9].mxu0 }
 0x39b   : > { %v4580_v7 = vadd.f32 %v3453_v11, %v2873_v53  ;;  %v4426_v3 = vpop.f32.mrb[10].mxu1  ;;  %v4498_v10 = vpop.f32.mrb[10].mxu0 }
 0x39c   : > { %v3514_v26 = vadd.f32 %v3513_v18, %v3512_v24  ;;  %v4581_v5 = vadd.f32 %v4498_v10, %v4426_v3  ;;  %v2876_v28 = vpop.f32.mrb[11].mxu1  ;;  %v3456_v6 = vpop.f32.mrb[11].mxu0  ;;  %v3519_v31 = vsel %vm1485_vm13, %v4579_v54, 0.0 }
 0x39d   : > { %v3515_v9 = vsel %vm1485_vm13, %v4580_v7, 0.0  ;;  %v4582_v61 = vadd.f32 %v3456_v6, %v2876_v28 }
 0x39e   : > { %v3516_v4 = vadd.f32 %v3515_v9, %v3514_v26  ;;  %v3521_v16 = vsel %vm1485_vm13, %v4581_v5, 0.0 }
 0x39f   : > { %v3517_v15 = vsel %vm1485_vm13, %v4582_v61, 0.0 }
 0x3a0   : > { %v3518_v27 = vadd.f32 %v3517_v15, %v3516_v4 }
 0x3a1   : > { %v4429_v58 = vpop.f32.mrb[12].mxu1  ;;  %v4501_v45 = vpop.f32.mrb[12].mxu0 }
 0x3a2   : > { %v3520_v51 = vadd.f32 %v3519_v31, %v3518_v27  ;;  %v4583_v44 = vadd.f32 %v4501_v45, %v4429_v58  ;;  %v2889_v29 = vpop.f32.mrb[13].mxu1  ;;  %v3469_v8 = vpop.f32.mrb[13].mxu0 }
 0x3a3   : > { %v4584_v42 = vadd.f32 %v3469_v8, %v2889_v29  ;;  %v4430_v41 = vpop.f32.mrb[14].mxu1  ;;  %v4502_v50 = vpop.f32.mrb[14].mxu0 }
 0x3a4   : > { %v3522_v25 = vadd.f32 %v3521_v16, %v3520_v51  ;;  %v4585_v56 = vadd.f32 %v4502_v50, %v4430_v41  ;;  %v2892_v60 = vpop.f32.mrb[15].mxu1  ;;  %v3472_v0 = vpop.f32.mrb[15].mxu0  ;;  %v3527_v12 = vsel %vm1485_vm13, %v4583_v44, 0.0 }
 0x3a5   : > { %v3523_v32 = vsel %vm1485_vm13, %v4584_v42, 0.0  ;;  %v4586_v43 = vadd.f32 %v3472_v0, %v2892_v60 }
 0x3a6   : > { %v3524_v38 = vadd.f32 %v3523_v32, %v3522_v25  ;;  %v3529_v13 = vsel %vm1485_vm13, %v4585_v56, 0.0 }
 0x3a7   : > { %v3525_v2 = vsel %vm1485_vm13, %v4586_v43, 0.0 }
 0x3a8   : > { %v3526_v21 = vadd.f32 %v3525_v2, %v3524_v38 }
 0x3aa   : > { %v3528_v57 = vadd.f32 %v3527_v12, %v3526_v21 }
 0x3ac   : > { %v3530_v36 = vadd.f32 %v3529_v13, %v3528_v57 }
 0x3ae   : > { %v3531_v48 = vrot.slane %v3530_v36, 4 }
 0x3b0   : > { %v3532_v17 = vadd.f32 %v3531_v48, %v3530_v36 }
 0x3b2   : > { %v3533_v20 = vrot.slane %v3532_v17, 2 }
 0x3b4   : > { %v3534_v49 = vadd.f32 %v3533_v20, %v3532_v17 }
 0x3b6   : > { %v3535_v59 = vrot.slane %v3534_v49, 1 }
 0x3b8   : > { %v3536_v46 = vadd.f32 %v3535_v59, %v3534_v49 }
 0x3ba   : > { %v3538_v14 = vmul.f32 0.0078125, %v3536_v46 }
 0x3bc   : > { %v6091_v30 = vsub.f32 %v6055_v55, %v3538_v14  ;;  %v6094_v40 = vsub.f32 %v6059_v63, %v3538_v14  ;;  %v6097_v52 = vsub.f32 %v6053_v19, %v3538_v14  ;;  %v6100_v35 = vsub.f32 %v6057_v23, %v3538_v14 }
 0x3bd   : > { %v6103_v62 = vsub.f32 %v6071_v34, %v3538_v14  ;;  %v6105_v1 = vsub.f32 %v4578_v22, %v3538_v14  ;;  %v6108_v33 = vsub.f32 %v6067_v47, %v3538_v14  ;;  %v6111_v55 = vsub.f32 %v6073_v37, %v3538_v14 }
 0x3be   : > { %v6113_v39 = vsub.f32 %v4580_v7, %v3538_v14  ;;  %v6115_v63 = vsub.f32 %v4582_v61, %v3538_v14  ;;  %v6117_v19 = vsub.f32 %v4579_v54, %v3538_v14  ;;  %v6119_v24 = vsub.f32 %v4581_v5, %v3538_v14 }
 0x3bf   : > { %v6121_v23 = vsub.f32 %v4584_v42, %v3538_v14  ;;  %v6123_v34 = vsub.f32 %v4586_v43, %v3538_v14  ;;  %v6125_v22 = vsub.f32 %v4583_v44, %v3538_v14  ;;  %v6127_v53 = vsub.f32 %v4585_v56, %v3538_v14 }
 0x3c0   : > { %v3555_v47 = vmul.f32 %v6091_v30, %v6091_v30  ;;  %v3556_v37 = vmul.f32 %v6094_v40, %v6094_v40  ;;  %v3557_v54 = vmul.f32 %v6097_v52, %v6097_v52  ;;  %v3558_v11 = vmul.f32 %v6100_v35, %v6100_v35 }
 0x3c1   : > { %v3559_v10 = vmul.f32 %v6103_v62, %v6103_v62  ;;  %v3560_v28 = vmul.f32 %v6105_v1, %v6105_v1  ;;  %v3561_v61 = vmul.f32 %v6108_v33, %v6108_v33  ;;  %v3562_v27 = vmul.f32 %v6111_v55, %v6111_v55 }
 0x3c2   : > { %v3571_v18 = vsel %vm1485_vm13, %v3555_v47, 0.0  ;;  %v3572_v7 = vsel %vm1485_vm13, %v3556_v37, 0.0  ;;  %v3574_v26 = vsel %vm1485_vm13, %v3557_v54, 0.0  ;;  %v3576_v6 = vsel %vm1485_vm13, %v3558_v11, 0.0 }
 0x3c3   : > { %v3573_v3 = vadd.f32 %v3572_v7, %v3571_v18  ;;  %v3578_v4 = vsel %vm1485_vm13, %v3559_v10, 0.0  ;;  %v3580_v31 = vsel %vm1485_vm13, %v3560_v28, 0.0  ;;  %v3563_v45 = vmul.f32 %v6113_v39, %v6113_v39 }
 0x3c4   : > { %v3582_v51 = vsel %vm1485_vm13, %v3561_v61, 0.0  ;;  %v3564_v29 = vmul.f32 %v6115_v63, %v6115_v63  ;;  %v3584_v8 = vsel %vm1485_vm13, %v3562_v27, 0.0  ;;  %v3565_v42 = vmul.f32 %v6117_v19, %v6117_v19 }
 0x3c5   : > { %v3575_v5 = vadd.f32 %v3574_v26, %v3573_v3  ;;  %v3586_v41 = vsel %vm1485_vm13, %v3563_v45, 0.0  ;;  %v3566_v25 = vmul.f32 %v6119_v24, %v6119_v24  ;;  %v3567_v0 = vmul.f32 %v6121_v23, %v6121_v23 }
 0x3c6   : > { %v3588_v56 = vsel %vm1485_vm13, %v3564_v29, 0.0  ;;  %v3590_v32 = vsel %vm1485_vm13, %v3565_v42, 0.0  ;;  %v3568_v38 = vmul.f32 %v6123_v34, %v6123_v34  ;;  %v3569_v12 = vmul.f32 %v6125_v22, %v6125_v22 }
 0x3c7   : > { %v3577_v9 = vadd.f32 %v3576_v6, %v3575_v5  ;;  %v3592_v2 = vsel %vm1485_vm13, %v3566_v25, 0.0  ;;  %v3594_v57 = vsel %vm1485_vm13, %v3567_v0, 0.0  ;;  %v3570_v36 = vmul.f32 %v6127_v53, %v6127_v53 }
 0x3c8   : > { %v3596_v48 = vsel %vm1485_vm13, %v3568_v38, 0.0  ;;  %v3598_v20 = vsel %vm1485_vm13, %v3569_v12, 0.0 }
 0x3c9   : > { %v3579_v15 = vadd.f32 %v3578_v4, %v3577_v9  ;;  %v3600_v59 = vsel %vm1485_vm13, %v3570_v36, 0.0  ;;  %v4033_v9 = vld [vmem:[%s6271_s5] ss:$0 sm:$0xff] }
 0x3cb   : > { %v3581_v58 = vadd.f32 %v3580_v31, %v3579_v15 }
 0x3cd   : > { %v3583_v44 = vadd.f32 %v3582_v51, %v3581_v58 }
 0x3cf   : > { %v3585_v16 = vadd.f32 %v3584_v8, %v3583_v44 }
 0x3d1   : > { %v3587_v50 = vadd.f32 %v3586_v41, %v3585_v16 }
 0x3d3   : > { %v3589_v60 = vadd.f32 %v3588_v56, %v3587_v50 }
 0x3d5   : > { %v3591_v43 = vadd.f32 %v3590_v32, %v3589_v60 }
 0x3d7   : > { %v3593_v21 = vadd.f32 %v3592_v2, %v3591_v43 }
 0x3d9   : > { %v3595_v13 = vadd.f32 %v3594_v57, %v3593_v21 }
 0x3db   : > { %v3597_v17 = vadd.f32 %v3596_v48, %v3595_v13 }
 0x3dd   : > { %v3599_v49 = vadd.f32 %v3598_v20, %v3597_v17 }
 0x3df   : > { %v3601_v46 = vadd.f32 %v3600_v59, %v3599_v49 }
 0x3e1   : > { %v3602_v14 = vrot.slane %v3601_v46, 4 }
 0x3e3   : > { %v3603_v47 = vadd.f32 %v3602_v14, %v3601_v46 }
 0x3e5   : > { %v3604_v37 = vrot.slane %v3603_v47, 2 }
 0x3e7   : > { %v3605_v54 = vadd.f32 %v3604_v37, %v3603_v47 }
 0x3e9   : > { %v3606_v11 = vrot.slane %v3605_v54, 1 }
 0x3eb   : > { %v3607_v18 = vadd.f32 %v3606_v11, %v3605_v54 }
 0x3ed   : > { %v3608_v7 = vmul.f32 0.0078125, %v3607_v18 }
 0x3ef   : > { %v3611_v3 = vadd.f32 1e-05, %v3608_v7 }
 0x3f1   : > { %4731 = vrsqrt.f32 %v3611_v3 }
 0x3fb   : > { %v4732_v10 = vpop.eup %4731 }
 0x3fc   : > { %v3613_v26 = vmul.f32 %v4732_v10, %v6091_v30  ;;  %v3614_v5 = vmul.f32 %v4732_v10, %v6094_v40  ;;  %v3615_v28 = vmul.f32 %v4732_v10, %v6097_v52  ;;  %v3616_v6 = vmul.f32 %v4732_v10, %v6100_v35 }
 0x3fd   : > { %v3617_v61 = vmul.f32 %v4732_v10, %v6103_v62  ;;  %v3618_v4 = vmul.f32 %v4732_v10, %v6105_v1  ;;  %v3619_v15 = vmul.f32 %v4732_v10, %v6108_v33  ;;  %v3620_v27 = vmul.f32 %v4732_v10, %v6111_v55 }
 0x3fe   : > { %v3621_v30 = vmul.f32 %v4732_v10, %v6113_v39  ;;  %v3622_v40 = vmul.f32 %v4732_v10, %v6115_v63  ;;  %v3623_v52 = vmul.f32 %v4732_v10, %v6117_v19  ;;  %v3624_v35 = vmul.f32 %v4732_v10, %v6119_v24  ;;  %v4034_v39 = vld [vmem:[%s6272_s6] ss:$0 sm:$0xff] }
 0x3ff   : > { %v3625_v31 = vmul.f32 %v4732_v10, %v6121_v23  ;;  %v3626_v58 = vmul.f32 %v4732_v10, %v6123_v34  ;;  %v3627_v62 = vmul.f32 %v4732_v10, %v6125_v22  ;;  %v3628_v1 = vmul.f32 %v4732_v10, %v6127_v53 }
 0x400   : > { %v3635_v45 = vmul.f32 %v4033_v9, %v3613_v26  ;;  %v3636_v33 = vmul.f32 %v4033_v9, %v3614_v5  ;;  %v3637_v51 = vmul.f32 %v4033_v9, %v3615_v28  ;;  %v3638_v55 = vmul.f32 %v4033_v9, %v3616_v6 }
 0x401   : > { %v3639_v63 = vmul.f32 %v4033_v9, %v3617_v61  ;;  %v3640_v19 = vmul.f32 %v4033_v9, %v3618_v4  ;;  %v3641_v44 = vmul.f32 %v4033_v9, %v3619_v15  ;;  %v3642_v24 = vmul.f32 %v4033_v9, %v3620_v27 }
 0x402   : > { %v3643_v29 = vmul.f32 %v4033_v9, %v3621_v30  ;;  %v3644_v23 = vmul.f32 %v4033_v9, %v3622_v40  ;;  %v3645_v8 = vmul.f32 %v4033_v9, %v3623_v52  ;;  %v3646_v34 = vmul.f32 %v4033_v9, %v3624_v35 }
 0x403   : > { %v3647_v16 = vmul.f32 %v4033_v9, %v3625_v31  ;;  %v3648_v22 = vmul.f32 %v4033_v9, %v3626_v58  ;;  %v3649_v42 = vmul.f32 %v4033_v9, %v3627_v62  ;;  %v3650_v53 = vmul.f32 %v4033_v9, %v3628_v1 }
 0x404   : > { %v3657_v41 = vadd.f32 %v4034_v39, %v3635_v45  ;;  %v3658_v50 = vadd.f32 %v4034_v39, %v3636_v33  ;;  %v3659_v25 = vadd.f32 %v4034_v39, %v3637_v51  ;;  %v3660_v56 = vadd.f32 %v4034_v39, %v3638_v55 }
 0x405   : > { %v3661_v60 = vadd.f32 %v4034_v39, %v3639_v63  ;;  %v3662_v0 = vadd.f32 %v4034_v39, %v3640_v19  ;;  %v3663_v32 = vadd.f32 %v4034_v39, %v3641_v44  ;;  %v3664_v43 = vadd.f32 %v4034_v39, %v3642_v24 }
 0x406   : > { %v3665_v38 = vadd.f32 %v4034_v39, %v3643_v29  ;;  %v3666_v2 = vadd.f32 %v4034_v39, %v3644_v23  ;;  %v3667_v21 = vadd.f32 %v4034_v39, %v3645_v8  ;;  %v3668_v12 = vadd.f32 %v4034_v39, %v3646_v34 }
 0x407   : > { %v3669_v57 = vadd.f32 %v4034_v39, %v3647_v16  ;;  %v3670_v13 = vadd.f32 %v4034_v39, %v3648_v22  ;;  %v3671_v36 = vadd.f32 %v4034_v39, %v3649_v42  ;;  %v3672_v48 = vadd.f32 %v4034_v39, %v3650_v53 }
 0x408   : > { %v3673_v17 = vmax.f32 %v3657_v41, 0.0  ;;  %v3674_v20 = vmax.f32 %v3658_v50, 0.0  ;;  %v3675_v49 = vmax.f32 %v3659_v25, 0.0  ;;  %v3676_v59 = vmax.f32 %v3660_v56, 0.0 }
 0x409   : > { %v3677_v46 = vmax.f32 %v3661_v60, 0.0  ;;  %v3678_v14 = vmax.f32 %v3662_v0, 0.0  ;;  %v3679_v47 = vmax.f32 %v3663_v32, 0.0  ;;  %v3680_v37 = vmax.f32 %v3664_v43, 0.0 }
 0x40a   : > { %v3681_v54 = vmax.f32 %v3665_v38, 0.0  ;;  %v3682_v11 = vmax.f32 %v3666_v2, 0.0  ;;  %v3683_v18 = vmax.f32 %v3667_v21, 0.0  ;;  %v3684_v7 = vmax.f32 %v3668_v12, 0.0  ;;  %3689 = vst.msk [vmem:[%s6273_s7] sm:$0xff] %vm1485_vm13, %v3673_v17  ;;  %3690 = vst.msk [vmem:[%s6273_s7 + $0x8] sm:$0xff] %vm1485_vm13, %v3674_v20 }
 0x40b   : > { %3691 = vst.msk [vmem:[%s6273_s7 + $0x10] sm:$0xff] %vm1485_vm13, %v3675_v49  ;;  %3692 = vst.msk [vmem:[%s6273_s7 + $0x18] sm:$0xff] %vm1485_vm13, %v3676_v59  ;;  %v3685_v3 = vmax.f32 %v3669_v57, 0.0  ;;  %v3686_v10 = vmax.f32 %v3670_v13, 0.0  ;;  %v3687_v26 = vmax.f32 %v3671_v36, 0.0  ;;  %v3688_v5 = vmax.f32 %v3672_v48, 0.0 }
 0x40c   : > { %3693 = vst.msk [vmem:[%s6273_s7 + $0x20] sm:$0xff] %vm1485_vm13, %v3677_v46  ;;  %3694 = vst.msk [vmem:[%s6273_s7 + $0x28] sm:$0xff] %vm1485_vm13, %v3678_v14 }
 0x40d   : > { %3695 = vst.msk [vmem:[%s6273_s7 + $0x30] sm:$0xff] %vm1485_vm13, %v3679_v47  ;;  %3696 = vst.msk [vmem:[%s6273_s7 + $0x38] sm:$0xff] %vm1485_vm13, %v3680_v37 }
 0x40e   : > { %3697 = vst.msk [vmem:[%s6273_s7 + $0x40] sm:$0xff] %vm1485_vm13, %v3681_v54  ;;  %3698 = vst.msk [vmem:[%s6273_s7 + $0x48] sm:$0xff] %vm1485_vm13, %v3682_v11 }
 0x40f   : > { %3699 = vst.msk [vmem:[%s6273_s7 + $0x50] sm:$0xff] %vm1485_vm13, %v3683_v18  ;;  %3700 = vst.msk [vmem:[%s6273_s7 + $0x58] sm:$0xff] %vm1485_vm13, %v3684_v7 }
 0x410   : > { %3701 = vst.msk [vmem:[%s6273_s7 + $0x60] sm:$0xff] %vm1485_vm13, %v3685_v3  ;;  %3702 = vst.msk [vmem:[%s6273_s7 + $0x68] sm:$0xff] %vm1485_vm13, %v3686_v10 }
 0x411   : > { %3703 = vst.msk [vmem:[%s6273_s7 + $0x70] sm:$0xff] %vm1485_vm13, %v3687_v26  ;;  %3704 = vst.msk [vmem:[%s6273_s7 + $0x78] sm:$0xff] %vm1485_vm13, %v3688_v5 }
 0x412 PF: > { %s17_s24 = sadd.s32 1, %s4740_s24  }
 0x413   : > { %p14_p6 = scmp.ge.s32.totalorder %s17_s24, 4  }
 0x415   :  { %16 = sbr.rel (!%p14_p6) target bundleno = 1 (0x1), region = 85 }

</bundles_post_ra>
